<compile_context>
chip_gen: v7x
topology: tpu7x:2x2x1
jax: 0.10.0
libtpu: 0.0.40
codegen_flags: <defaults>
</compile_context>

<pallas_src>
import functools
import math

import jax
import jax.numpy as jnp
from jax.experimental import pallas as pl
from jax.experimental.pallas import tpu as pltpu

# Module hyper-params (embedding_dim == 3 * size_emb_dim so the final add is valid,
# matching PixArt usage: resolution contributes 2*outdim, aspect_ratio 1*outdim).
EMBED_DIM = 384        # embedding_dim
SIZE_EMB_DIM = 128     # size_emb_dim
NUM_FREQ_CH = 256      # Timesteps(num_channels=256)
HALF = NUM_FREQ_CH // 2
SUBLANE = 8


# ----------------------------------------------------------------------------
# Kernel helpers (traced inside the Pallas body)
# ----------------------------------------------------------------------------
def _silu(x):
    return x * jax.nn.sigmoid(x)


def _sincos_proj(vals, freqs):
    # Timesteps(256, flip_sin_to_cos=True, shift=0): proj = [cos | sin]
    emb = vals * freqs                                   # (M,1)*(1,HALF) -> (M,HALF)
    return jnp.concatenate([jnp.cos(emb), jnp.sin(emb)], axis=-1)   # (M, 2*HALF)


def _mlp(proj_f32, w1, b1, w2, b2):
    # bf16 MXU operands, f32 accumulate + f32 epilogue (bias, SiLU).
    h = jnp.dot(proj_f32.astype(w1.dtype), w1, preferred_element_type=jnp.float32) + b1
    h = _silu(h)
    return jnp.dot(h.astype(w2.dtype), w2, preferred_element_type=jnp.float32) + b2


# ----------------------------------------------------------------------------
# Pallas kernels
# ----------------------------------------------------------------------------
def _fused_kernel(vals_ref, freqs_ref,
                  w1t_ref, b1t_ref, w2t_ref, b2t_ref,
                  w1s_ref, b1s_ref, w2s_ref, b2s_ref,
                  out_ref, *, batch, rows_pad, n_size):
    """Fused time_proj + timestep/resolution/aspect_ratio embedders + combine."""
    # One shared sin/cos pass for all (1 + n_size) scalar streams.
    proj = _sincos_proj(vals_ref[...], freqs_ref[...])            # ((1+n)*rows_pad, 256)

    # --- timestep embedder (256 -> EMBED_DIM -> EMBED_DIM) ---
    proj_t = proj[:rows_pad]                                      # (rows_pad, 256)
    temb = _mlp(proj_t, w1t_ref[...], b1t_ref[...], w2t_ref[...], b2t_ref[...])

    # --- stacked size embedders (resolution x res_dims, aspect_ratio x ar_dims) ---
    proj_s = proj[rows_pad:].reshape(n_size, rows_pad, 2 * HALF)  # (n, rows_pad, 256)
    w1s = w1s_ref[...]
    w2s = w2s_ref[...]
    h = jnp.einsum("gmk,gkn->gmn", proj_s.astype(w1s.dtype), w1s,
                   preferred_element_type=jnp.float32) + b1s_ref[...]
    h = _silu(h)
    s = jnp.einsum("gmk,gkn->gmn", h.astype(w2s.dtype), w2s,
                   preferred_element_type=jnp.float32) + b2s_ref[...]   # (n, rows_pad, 128)

    # conditioning = temb + concat([res_emb, ar_emb], dim=1) — one lane-dense store.
    size_cat = jnp.concatenate([s[g] for g in range(n_size)], axis=-1)  # (rows_pad, n*128)
    out = temb + size_cat
    out_ref[...] = out[:batch].astype(out_ref.dtype)


def _timestep_kernel(vals_ref, freqs_ref, w1_ref, b1_ref, w2_ref, b2_ref, out_ref, *, batch):
    """use_additional_conditions=False path: time_proj + timestep_embedder only."""
    proj = _sincos_proj(vals_ref[...], freqs_ref[...])
    out = _mlp(proj, w1_ref[...], b1_ref[...], w2_ref[...], b2_ref[...])
    out_ref[...] = out[:batch].astype(out_ref.dtype)


# ----------------------------------------------------------------------------
# Wrappers
# ----------------------------------------------------------------------------
def _vmem_spec():
    # Whole array, single-buffered, resident in VMEM (no grid -> no pipelining needed).
    return pl.BlockSpec(memory_space=pltpu.MemorySpace.VMEM)


def _pad_rows(x, rows_pad):
    # (B,) scalar stream -> (rows_pad, 1) f32, zero-padded to a full sublane tile.
    b = x.shape[0]
    x = x.astype(jnp.float32).reshape(b, 1)
    if b < rows_pad:
        x = jnp.pad(x, ((0, rows_pad - b), (0, 0)))
    return x


def _normalize_size(size, batch_size):
    # Mirrors apply_condition's shape handling (trace-time / static shapes).
    if size.ndim == 1:
        size = size[:, None]
    if size.shape[0] != batch_size:
        size = jnp.tile(size, (batch_size // size.shape[0], 1))
        if size.shape[0] != batch_size:
            raise ValueError(f"`batch_size` should be {size.shape[0]} but found {batch_size}.")
    return size


def combined_timestep_size_embeddings(timestep, resolution, aspect_ratio, batch_size, params,
                                      use_additional_conditions=True):
    # TODO(synk): plumb `hidden_dtype` through; output is kept float32, MXU operands bf16.
    rows_pad = ((batch_size + SUBLANE - 1) // SUBLANE) * SUBLANE
    pt = params["timestep"]

    if not use_additional_conditions:
        vals = _pad_rows(timestep, rows_pad)
        return pl.pallas_call(
            functools.partial(_timestep_kernel, batch=batch_size),
            in_specs=[_vmem_spec()] * 6,
            out_specs=_vmem_spec(),
            out_shape=jax.ShapeDtypeStruct((batch_size, EMBED_DIM), jnp.float32),
        )(vals, pt["freqs"], pt["w1"], pt["b1"], pt["w2"], pt["b2"])

    resolution = _normalize_size(resolution, batch_size)
    aspect_ratio = _normalize_size(aspect_ratio, batch_size)
    res_dims, ar_dims = resolution.shape[1], aspect_ratio.shape[1]
    n_size = res_dims + ar_dims
    ps = params["size"]
    assert ps["w1"].shape[0] == n_size, "stacked size params must match res/ar dims"
    assert EMBED_DIM == n_size * SIZE_EMB_DIM, \
        "conditioning add requires embedding_dim == (res_dims + ar_dims) * size_emb_dim"

    # Scalar streams: [timestep | res[:,0] | res[:,1] | ... | ar[:,0] | ...], each padded to rows_pad.
    streams = ([timestep]
               + [resolution[:, d] for d in range(res_dims)]
               + [aspect_ratio[:, d] for d in range(ar_dims)])
    vals = jnp.concatenate([_pad_rows(s, rows_pad) for s in streams], axis=0)  # ((1+n)*rows_pad, 1)

    return pl.pallas_call(
        functools.partial(_fused_kernel, batch=batch_size, rows_pad=rows_pad, n_size=n_size),
        in_specs=[_vmem_spec()] * 10,
        out_specs=_vmem_spec(),
        out_shape=jax.ShapeDtypeStruct((batch_size, EMBED_DIM), jnp.float32),
    )(vals, pt["freqs"], pt["w1"], pt["b1"], pt["w2"], pt["b2"],
      ps["w1"], ps["b1"], ps["w2"], ps["b2"])


# ----------------------------------------------------------------------------
# Deterministic parameter construction (nn.Linear default init ranges; bf16 weights)
# ----------------------------------------------------------------------------
def make_mlp_params(key, out_dim):
    k1, k2, k3, k4 = jax.random.split(key, 4)
    lim1 = 1.0 / math.sqrt(NUM_FREQ_CH)
    w1 = jax.random.uniform(k1, (NUM_FREQ_CH, out_dim), jnp.float32, -lim1, lim1)
    b1 = jax.random.uniform(k2, (1, out_dim), jnp.float32, -lim1, lim1)
    lim2 = 1.0 / math.sqrt(out_dim)
    w2 = jax.random.uniform(k3, (out_dim, out_dim), jnp.float32, -lim2, lim2)
    b2 = jax.random.uniform(k4, (1, out_dim), jnp.float32, -lim2, lim2)
    # Timesteps frequencies: exp(-ln(10000) * arange(half) / (half - shift)), shift = 0
    exponent = -math.log(10000.0) * jnp.arange(HALF, dtype=jnp.float32) / HALF
    freqs = jnp.exp(exponent).reshape(1, HALF)
    return dict(freqs=freqs,
                w1=w1.astype(jnp.bfloat16), b1=b1,
                w2=w2.astype(jnp.bfloat16), b2=b2)


def build_params(key, res_dims=2, ar_dims=1):
    k1, k2, k3 = jax.random.split(key, 3)
    p_t = make_mlp_params(k1, EMBED_DIM)
    p_r = make_mlp_params(k2, SIZE_EMB_DIM)
    p_a = make_mlp_params(k3, SIZE_EMB_DIM)
    # Pre-stack the size-embedder weights once (resolution weights repeated per dim, then AR).
    size = {k: jnp.stack([p_r[k]] * res_dims + [p_a[k]] * ar_dims, axis=0)
            for k in ("w1", "b1", "w2", "b2")}
    return {"timestep": p_t, "resolution": p_r, "aspect_ratio": p_a, "size": size}


# ----------------------------------------------------------------------------
# Pure-JAX reference with identical precision discipline (bf16 operands, f32 acc)
# ----------------------------------------------------------------------------
def _ref_embed(vals, p):
    emb = vals.astype(jnp.float32)[:, None] * p["freqs"][0][None, :]
    proj = jnp.concatenate([jnp.cos(emb), jnp.sin(emb)], axis=-1)
    h = jnp.dot(proj.astype(jnp.bfloat16), p["w1"], preferred_element_type=jnp.float32) + p["b1"]
    h = h * jax.nn.sigmoid(h)
    return jnp.dot(h.astype(jnp.bfloat16), p["w2"], preferred_element_type=jnp.float32) + p["b2"]


def _ref_forward(timestep, resolution, aspect_ratio, batch_size, params):
    temb = _ref_embed(timestep, params["timestep"])
    res = _ref_embed(resolution.reshape(-1), params["resolution"]).reshape(batch_size, -1)
    ar = _ref_embed(aspect_ratio.reshape(-1), params["aspect_ratio"]).reshape(batch_size, -1)
    return temb + jnp.concatenate([res, ar], axis=1)


if __name__ == "__main__":
    key = jax.random.PRNGKey(0)
    kp, kt, kr, ka = jax.random.split(key, 4)

    batch_size = 2
    timestep = jax.random.uniform(kt, (batch_size,), jnp.float32, 0.0, 1000.0)
    resolution = jax.random.uniform(kr, (batch_size, 2), jnp.float32, 256.0, 1024.0)
    aspect_ratio = jax.random.uniform(ka, (batch_size, 1), jnp.float32, 0.5, 2.0)

    params = build_params(kp, res_dims=2, ar_dims=1)

    fwd = jax.jit(combined_timestep_size_embeddings,
                  static_argnames=("batch_size", "use_additional_conditions"))

    # Full path (use_additional_conditions=True): one fused pallas_call.
    out = jax.block_until_ready(
        fwd(timestep, resolution, aspect_ratio, batch_size=batch_size, params=params,
            use_additional_conditions=True))
    ref = _ref_forward(timestep, resolution, aspect_ratio, batch_size, params)
    assert out.shape == (batch_size, EMBED_DIM), out.shape
    # Tolerance accounts for bf16 MXU operands (one-ulp rounding differences).
    assert jnp.allclose(out, ref, atol=5e-3, rtol=5e-3), (
        "mismatch vs pure-JAX reference, max abs err = "
        f"{float(jnp.max(jnp.abs(out - ref)))}")

    # Timestep-only path (use_additional_conditions=False).
    out_t = jax.block_until_ready(
        fwd(timestep, resolution, aspect_ratio, batch_size=batch_size, params=params,
            use_additional_conditions=False))
    ref_t = _ref_embed(timestep, params["timestep"])
    assert out_t.shape == (batch_size, EMBED_DIM), out_t.shape
    assert jnp.allclose(out_t, ref_t, atol=5e-3, rtol=5e-3), "mismatch on timestep-only path"

    print("KERNEL_OK")
</pallas_src>

<mosaic_0001>
module attributes {stable_mosaic.version = 11 : i64} {
  func.func @_fused_kernel(%arg0: memref<32x1xf32, #tpu.memory_space<vmem>>, %arg1: memref<1x128xf32, #tpu.memory_space<vmem>>, %arg2: memref<256x384xbf16, #tpu.memory_space<vmem>>, %arg3: memref<1x384xf32, #tpu.memory_space<vmem>>, %arg4: memref<384x384xbf16, #tpu.memory_space<vmem>>, %arg5: memref<1x384xf32, #tpu.memory_space<vmem>>, %arg6: memref<3x256x128xbf16, #tpu.memory_space<vmem>>, %arg7: memref<3x1x128xf32, #tpu.memory_space<vmem>>, %arg8: memref<3x128x128xbf16, #tpu.memory_space<vmem>>, %arg9: memref<3x1x128xf32, #tpu.memory_space<vmem>>, %arg10: memref<2x384xf32, #tpu.memory_space<vmem>>) attributes {dimension_semantics = [], scalar_prefetch = 0 : i64, scratch_operands = 0 : i64, tpu.core_type = #tpu.core_type<tc>} {
    %c0 = arith.constant 0 : index
    %c0_0 = arith.constant 0 : index
    %0 = vector.load %arg0[%c0, %c0_0] : memref<32x1xf32, #tpu.memory_space<vmem>>, vector<32x1xf32>
    %c0_1 = arith.constant 0 : index
    %c0_2 = arith.constant 0 : index
    %1 = vector.load %arg1[%c0_1, %c0_2] : memref<1x128xf32, #tpu.memory_space<vmem>>, vector<1x128xf32>
    %2 = vector.broadcast %0 : vector<32x1xf32> to vector<32x128xf32>
    %3 = vector.broadcast %1 : vector<1x128xf32> to vector<32x128xf32>
    %4 = arith.mulf %2, %3 : vector<32x128xf32>
    %5 = math.cos %4 : vector<32x128xf32>
    %6 = math.sin %4 : vector<32x128xf32>
    %7 = tpu.concatenate %5, %6 in 1 : vector<32x128xf32>, vector<32x128xf32> -> vector<32x256xf32>
    %8 = vector.extract_strided_slice %7 {offsets = [0, 0], sizes = [8, 256], strides = [1, 1]} : vector<32x256xf32> to vector<8x256xf32>
    %c0_3 = arith.constant 0 : index
    %c0_4 = arith.constant 0 : index
    %9 = vector.load %arg2[%c0_3, %c0_4] : memref<256x384xbf16, #tpu.memory_space<vmem>>, vector<256x384xbf16>
    %c0_5 = arith.constant 0 : index
    %c0_6 = arith.constant 0 : index
    %10 = vector.load %arg3[%c0_5, %c0_6] : memref<1x384xf32, #tpu.memory_space<vmem>>, vector<1x384xf32>
    %c0_7 = arith.constant 0 : index
    %c0_8 = arith.constant 0 : index
    %11 = vector.load %arg4[%c0_7, %c0_8] : memref<384x384xbf16, #tpu.memory_space<vmem>>, vector<384x384xbf16>
    %c0_9 = arith.constant 0 : index
    %c0_10 = arith.constant 0 : index
    %12 = vector.load %arg5[%c0_9, %c0_10] : memref<1x384xf32, #tpu.memory_space<vmem>>, vector<1x384xf32>
    %13 = arith.truncf %8 : vector<8x256xf32> to vector<8x256xbf16>
    %cst = arith.constant dense<0.000000e+00> : vector<8x384xf32>
    %14 = tpu.matmul %13, %9, %cst {dimension_numbers = #tpu.dot_dimension_numbers<[1], [0], [0], [1], [0, 0, 1, 1], [], []>} : vector<8x256xbf16>, vector<256x384xbf16>, vector<8x384xf32> -> vector<8x384xf32>
    %15 = vector.broadcast %10 : vector<1x384xf32> to vector<8x384xf32>
    %16 = arith.addf %14, %15 : vector<8x384xf32>
    %17 = arith.negf %16 : vector<8x384xf32>
    %18 = math.exp %17 : vector<8x384xf32>
    %cst_11 = arith.constant 1.000000e+00 : f32
    %19 = vector.broadcast %cst_11 : f32 to vector<8x384xf32>
    %20 = arith.addf %19, %18 : vector<8x384xf32>
    %21 = arith.divf %19, %20 : vector<8x384xf32>
    %22 = arith.mulf %16, %21 : vector<8x384xf32>
    %23 = arith.truncf %22 : vector<8x384xf32> to vector<8x384xbf16>
    %cst_12 = arith.constant dense<0.000000e+00> : vector<8x384xf32>
    %24 = tpu.matmul %23, %11, %cst_12 {dimension_numbers = #tpu.dot_dimension_numbers<[1], [0], [0], [1], [0, 0, 1, 1], [], []>} : vector<8x384xbf16>, vector<384x384xbf16>, vector<8x384xf32> -> vector<8x384xf32>
    %25 = vector.broadcast %12 : vector<1x384xf32> to vector<8x384xf32>
    %26 = arith.addf %24, %25 : vector<8x384xf32>
    %27 = vector.extract_strided_slice %7 {offsets = [8, 0], sizes = [24, 256], strides = [1, 1]} : vector<32x256xf32> to vector<24x256xf32>
    %28 = vector.shape_cast %27 : vector<24x256xf32> to vector<3x8x256xf32>
    %c0_13 = arith.constant 0 : index
    %c0_14 = arith.constant 0 : index
    %c0_15 = arith.constant 0 : index
    %29 = vector.load %arg6[%c0_13, %c0_14, %c0_15] : memref<3x256x128xbf16, #tpu.memory_space<vmem>>, vector<3x256x128xbf16>
    %c0_16 = arith.constant 0 : index
    %c0_17 = arith.constant 0 : index
    %c0_18 = arith.constant 0 : index
    %30 = vector.load %arg8[%c0_16, %c0_17, %c0_18] : memref<3x128x128xbf16, #tpu.memory_space<vmem>>, vector<3x128x128xbf16>
    %31 = arith.truncf %28 : vector<3x8x256xf32> to vector<3x8x256xbf16>
    "tpu.trace_start"() <{level = 10 : i32, message = "gmk,gkn->gmn"}> : () -> ()
    %cst_19 = arith.constant dense<0.000000e+00> : vector<3x8x128xf32>
    %32 = tpu.matmul %31, %29, %cst_19 {dimension_numbers = #tpu.dot_dimension_numbers<[2], [1], [1], [2], [0, 0, 0, 1, 1, 2], [0], [0]>} : vector<3x8x256xbf16>, vector<3x256x128xbf16>, vector<3x8x128xf32> -> vector<3x8x128xf32>
    "tpu.trace_stop"() : () -> ()
    %c0_20 = arith.constant 0 : index
    %c0_21 = arith.constant 0 : index
    %c0_22 = arith.constant 0 : index
    %33 = vector.load %arg7[%c0_20, %c0_21, %c0_22] : memref<3x1x128xf32, #tpu.memory_space<vmem>>, vector<3x1x128xf32>
    %34 = vector.broadcast %33 : vector<3x1x128xf32> to vector<3x8x128xf32>
    %35 = arith.addf %32, %34 : vector<3x8x128xf32>
    %36 = arith.negf %35 : vector<3x8x128xf32>
    %37 = math.exp %36 : vector<3x8x128xf32>
    %cst_23 = arith.constant 1.000000e+00 : f32
    %38 = vector.broadcast %cst_23 : f32 to vector<3x8x128xf32>
    %39 = arith.addf %38, %37 : vector<3x8x128xf32>
    %40 = arith.divf %38, %39 : vector<3x8x128xf32>
    %41 = arith.mulf %35, %40 : vector<3x8x128xf32>
    %42 = arith.truncf %41 : vector<3x8x128xf32> to vector<3x8x128xbf16>
    "tpu.trace_start"() <{level = 10 : i32, message = "gmk,gkn->gmn"}> : () -> ()
    %cst_24 = arith.constant dense<0.000000e+00> : vector<3x8x128xf32>
    %43 = tpu.matmul %42, %30, %cst_24 {dimension_numbers = #tpu.dot_dimension_numbers<[2], [1], [1], [2], [0, 0, 0, 1, 1, 2], [0], [0]>} : vector<3x8x128xbf16>, vector<3x128x128xbf16>, vector<3x8x128xf32> -> vector<3x8x128xf32>
    "tpu.trace_stop"() : () -> ()
    %c0_25 = arith.constant 0 : index
    %c0_26 = arith.constant 0 : index
    %c0_27 = arith.constant 0 : index
    %44 = vector.load %arg9[%c0_25, %c0_26, %c0_27] : memref<3x1x128xf32, #tpu.memory_space<vmem>>, vector<3x1x128xf32>
    %45 = vector.broadcast %44 : vector<3x1x128xf32> to vector<3x8x128xf32>
    %46 = arith.addf %43, %45 : vector<3x8x128xf32>
    %47 = vector.extract_strided_slice %46 {offsets = [0, 0, 0], sizes = [1, 8, 128], strides = [1, 1, 1]} : vector<3x8x128xf32> to vector<1x8x128xf32>
    %48 = vector.shape_cast %47 : vector<1x8x128xf32> to vector<8x128xf32>
    %49 = vector.extract_strided_slice %46 {offsets = [1, 0, 0], sizes = [1, 8, 128], strides = [1, 1, 1]} : vector<3x8x128xf32> to vector<1x8x128xf32>
    %50 = vector.shape_cast %49 : vector<1x8x128xf32> to vector<8x128xf32>
    %51 = vector.extract_strided_slice %46 {offsets = [2, 0, 0], sizes = [1, 8, 128], strides = [1, 1, 1]} : vector<3x8x128xf32> to vector<1x8x128xf32>
    %52 = vector.shape_cast %51 : vector<1x8x128xf32> to vector<8x128xf32>
    %53 = tpu.concatenate %48, %50, %52 in 1 : vector<8x128xf32>, vector<8x128xf32>, vector<8x128xf32> -> vector<8x384xf32>
    %54 = arith.addf %26, %53 : vector<8x384xf32>
    %55 = vector.extract_strided_slice %54 {offsets = [0, 0], sizes = [2, 384], strides = [1, 1]} : vector<8x384xf32> to vector<2x384xf32>
    %c0_28 = arith.constant 0 : index
    %c0_29 = arith.constant 0 : index
    %56 = vector.load %arg10[%c0_28, %c0_29] : memref<2x384xf32, #tpu.memory_space<vmem>>, vector<2x384xf32>
    tpu.vector_store %arg10[%c0_28, %c0_29], %55 {strides = array<i32>} : memref<2x384xf32, #tpu.memory_space<vmem>>, vector<2x384xf32>,
    return
  }
}

</mosaic_0001>

<bundles_post_ra>
// kernel: combined_timestep_size_embeddings.1
= control target key start
LH: loop header
LB: loop body
LE: loop exit
PB: predicated region body
PF: predicated region fallthrough
CT: control target
= control target key end

     0   :  { %15 = vsyncpa [#allocation3], 0  ;;  %s4527_s0 = inlined_call_operand.vmem [shape: f32[32,1], index: 0, kind: input, shape index: {}]   ;;  %s4528_s1 = inlined_call_operand.vmem [shape: f32[1,128], index: 1, kind: input, shape index: {}]   ;;  %s4529_s2 = inlined_call_operand.hbm [shape: bf16[256,384], index: 2, kind: input, shape index: {}]   ;;  %s4530_s3 = inlined_call_operand.vmem [shape: f32[1,384], index: 3, kind: input, shape index: {}]   ;;  %s4531_s4 = inlined_call_operand.hbm [shape: bf16[384,384], index: 4, kind: input, shape index: {}]   ;;  %s4532_s5 = inlined_call_operand.vmem [shape: f32[1,384], index: 5, kind: input, shape index: {}]   ;;  %s4533_s6 = inlined_call_operand.hbm [shape: bf16[3,256,128], index: 6, kind: input, shape index: {}]   ;;  %s4534_s7 = inlined_call_operand.vmem [shape: f32[3,1,128], index: 7, kind: input, shape index: {}]   ;;  %s4535_s8 = inlined_call_operand.hbm [shape: bf16[3,128,128], index: 8, kind: input, shape index: {}]   ;;  %s4536_s9 = inlined_call_operand.vmem [shape: f32[3,1,128], index: 9, kind: input, shape index: {}]   ;;  %s4537_s10 = inlined_call_operand.hbm [shape: f32[2,384], index: 10, kind: output, shape index: {}]  }
   0x1   :  { %16 = vsyncpa [#allocation6], 0 }
   0x2   :  { %17 = vsyncpa [#allocation9], 0 }
   0x3   :  { %18 = vsyncpa [#allocation4], 0  ;;  %s3883_s13 = smov [#allocation5]   ;;  %s3884_s15 = smov [#allocation2]  }
   0x4   :  { %s42_s14 = sshll.u32 %s3883_s13, 4  ;;  %s28_s16 = sshll.u32 %s3884_s15, 4  ;;  %s43_s14 = int_to_ptr.vmem [resolvable:$true] %s42_s14  ;;  %s3957_s16 = int_to_ptr.vmem [resolvable:$true] %s28_s16 }
   0x5   :  { %s3765_s19 = scalar_lea.hbm %s4531_s4, 9216 }
   0x6   :  { %p3766_p0 = scmp.ne.s32.totalorder %s4531_s4, %s3765_s19  ;;  %p3769_p1 = scmp.lt.u32.totalorder %s3765_s19, %s4531_s4 }
   0x8   :  { %p3771_p2 = pnand %p3769_p1, %p3766_p0 }
   0xa   :  { %3774 = shalt.err (!%p3771_p2)
}
   0xb   :  { %s3775_s24 = scalar_lea.vmem %s43_s14, 9216  ;;  %p3780_p4 = scmp.lt.s32.totalorder %s43_s14, %s43_s14 }
   0xc   :  { %p3776_p3 = scmp.ne.s32.totalorder %s43_s14, %s3775_s24  ;;  %p3781_p5 = scmp.lt.s32.totalorder %s3775_s24, %s3775_s24 }
   0xe   :  { %p3782_p6 = por %p3781_p5, %p3780_p4 }
  0x10   :  { %p3783_p7 = pnand %p3782_p6, %p3776_p3 }
  0x12   :  { %3786 = shalt.err (!%p3783_p7)
}
  0x13   :  { %s3885_s25 = smov 192   ;;  %s3886_s26 = smov 12  }
  0x14   :  { %48 = dma.hbm_to_vmem [thread:$0]  %s4531_s4, 9216, %s43_s14, [#allocation6], %s3885_s25, %s3885_s25, %s3886_s26  }
  0x15   :  { %s3787_s11 = scalar_lea.hbm %s4529_s2, 6144 }
  0x16   :  { %p3788_p8 = scmp.ne.s32.totalorder %s4529_s2, %s3787_s11  ;;  %p3791_p9 = scmp.lt.u32.totalorder %s3787_s11, %s4529_s2 }
  0x18   :  { %p3793_p10 = pnand %p3791_p9, %p3788_p8 }
  0x1a   :  { %3796 = shalt.err (!%p3793_p10)
}
  0x1b   :  { %s3797_s18 = scalar_lea.vmem %s3957_s16, 6144  ;;  %p3802_p12 = scmp.lt.s32.totalorder %s3957_s16, %s3957_s16 }
  0x1c   :  { %p3798_p11 = scmp.ne.s32.totalorder %s3957_s16, %s3797_s18  ;;  %p3803_p13 = scmp.lt.s32.totalorder %s3797_s18, %s3797_s18 }
  0x1e   :  { %p3804_p0 = por %p3803_p13, %p3802_p12 }
  0x20   :  { %p3805_p1 = pnand %p3804_p0, %p3798_p11 }
  0x22   :  { %3808 = shalt.err (!%p3805_p1)
}
  0x23   :  { %34 = dma.hbm_to_vmem [thread:$0]  %s4529_s2, 6144, %s3957_s16, [#allocation3], %s3885_s25, %s3885_s25, %s3886_s26  }
  0x24   :  { %s3887_s19 = smov [#allocation7]   ;;  %s3809_s23 = scalar_lea.hbm %s4533_s6, 6144 }
  0x25   :  { %s56_s20 = sshll.u32 %s3887_s19, 4  ;;  %p3810_p2 = scmp.ne.s32.totalorder %s4533_s6, %s3809_s23  ;;  %s57_s20 = int_to_ptr.vmem [resolvable:$true] %s56_s20 }
  0x26   :  { %p3813_p3 = scmp.lt.u32.totalorder %s3809_s23, %s4533_s6 }
  0x28   :  { %p3815_p4 = pnand %p3813_p3, %p3810_p2 }
  0x2a   :  { %3818 = shalt.err (!%p3815_p4)
}
  0x2b   :  { %s3819_s30 = scalar_lea.vmem %s57_s20, 6144  ;;  %p3824_p6 = scmp.lt.s32.totalorder %s57_s20, %s57_s20 }
  0x2c   :  { %p3820_p5 = scmp.ne.s32.totalorder %s57_s20, %s3819_s30  ;;  %p3825_p7 = scmp.lt.s32.totalorder %s3819_s30, %s3819_s30 }
  0x2e   :  { %p3826_p8 = por %p3825_p7, %p3824_p6 }
  0x30   :  { %p3827_p9 = pnand %p3826_p8, %p3820_p5 }
  0x32   :  { %3830 = shalt.err (!%p3827_p9)
}
  0x33   :  { %s3888_s2 = smov 64   ;;  %s3889_s16 = smov 4  }
  0x34   :  { %62 = dma.hbm_to_vmem [thread:$0]  %s4533_s6, 6144, %s57_s20, [#allocation6], %s3888_s2, %s3888_s2, %s3889_s16  }
  0x35   :  { %s3890_s11 = smov [#allocation8]   ;;  %s3831_s17 = scalar_lea.hbm %s4535_s8, 3072 }
  0x36   :  { %s70_s12 = sshll.u32 %s3890_s11, 4  ;;  %p3832_p10 = scmp.ne.s32.totalorder %s4535_s8, %s3831_s17  ;;  %s71_s12 = int_to_ptr.vmem [resolvable:$true] %s70_s12 }
  0x37   :  { %p3835_p11 = scmp.lt.u32.totalorder %s3831_s17, %s4535_s8 }
  0x39   :  { %p3837_p12 = pnand %p3835_p11, %p3832_p10 }
  0x3b   :  { %3840 = shalt.err (!%p3837_p12)
}
  0x3c   :  { %s3841_s21 = scalar_lea.vmem %s71_s12, 3072  ;;  %p3846_p0 = scmp.lt.s32.totalorder %s71_s12, %s71_s12 }
  0x3d   :  { %p3842_p13 = scmp.ne.s32.totalorder %s71_s12, %s3841_s21  ;;  %p3847_p1 = scmp.lt.s32.totalorder %s3841_s21, %s3841_s21 }
  0x3f   :  { %p3848_p2 = por %p3847_p1, %p3846_p0 }
  0x41   :  { %p3849_p3 = pnand %p3848_p2, %p3842_p13 }
  0x43   :  { %3852 = shalt.err (!%p3849_p3)
}
  0x44   :  { %76 = dma.hbm_to_vmem [thread:$0]  %s4535_s8, 3072, %s71_s12, [#allocation9], %s3888_s2, %s3888_s2, %s3889_s16  }
  0x45   :  { %3875 = dma.done.wait [#allocation3], 6144  }
  0x46   :  { %3876 = vsyncadd [#allocation3], 4294961152 }
  0x47   :  { %3877 = dma.done.wait [#allocation6], 15360  }
  0x48   :  { %3878 = vsyncadd [#allocation6], 4294951936 }
  0x49   :  { %3879 = dma.done.wait [#allocation9], 3072  }
  0x4a   :  { %3880 = vsyncadd [#allocation9], 4294964224  ;;  %v3891_v0 = vmov 0   ;;  %v92_v1 = vld [vmem:[%s4527_s0] sm:$0xff]  ;;  %v93_v2 = vld [vmem:[%s4527_s0 + $0x8] sm:$0xff]  ;;  %s3901_s21 = smov [#allocation10]  }
  0x4b   :  { %3491 = vset.pattern.permute.xlu0 %v3891_v0  ;;  %3492 = vset.pattern.permute.xlu1 %v3891_v0  ;;  %v3493_v3 = vld [vmem:[#allocation2 + $0x4] ss:$12 sps:$4 sm:$0xff]   ;;  %v3495_v4 = vld [vmem:[#allocation2] ss:$12 sps:$4 sm:$0xff]   ;;  %v3496_v5 = vld [vmem:[#allocation2 + $0x1c] ss:$12 sps:$4 sm:$0xff]  }
  0x4c   :  { %99 = vperm.xlu0 %3491, %v92_v1   ;;  %1391 = vmatprep.subr.bf16.mxu0 %v3493_v3  ;;  %v3498_v6 = vld [vmem:[#allocation2 + $0x18] ss:$12 sps:$4 sm:$0xff]   ;;  %v3499_v7 = vld [vmem:[#allocation2 + $0x34] ss:$12 sps:$4 sm:$0xff]   ;;  %v3501_v8 = vld [vmem:[#allocation2 + $0x30] ss:$12 sps:$4 sm:$0xff]  }
  0x4d   :  { %1392 = vmatpush1.bf16.msra.mxu0 %v3495_v4  ;;  %v3502_v9 = vld [vmem:[#allocation2 + $0x4c] ss:$12 sps:$4 sm:$0xff]   ;;  %v3504_v10 = vld [vmem:[#allocation2 + $0x48] ss:$12 sps:$4 sm:$0xff]   ;;  %v3505_v11 = vld [vmem:[#allocation2 + $0x64] ss:$12 sps:$4 sm:$0xff]  }
  0x4e   :  { %1393 = vmatprep.subr.bf16.mxu0 %v3496_v5  ;;  %v3507_v12 = vld [vmem:[#allocation2 + $0x60] ss:$12 sps:$4 sm:$0xff]   ;;  %v3508_v13 = vld [vmem:[#allocation2 + $0x7c] ss:$12 sps:$4 sm:$0xff]   ;;  %v3510_v14 = vld [vmem:[#allocation2 + $0x78] ss:$12 sps:$4 sm:$0xff]  }
  0x4f   :  { %v3511_v15 = vld [vmem:[#allocation2 + $0x94] ss:$12 sps:$4 sm:$0xff]   ;;  %v3513_v16 = vld [vmem:[#allocation2 + $0x90] ss:$12 sps:$4 sm:$0xff]   ;;  %v3514_v17 = vld [vmem:[#allocation2 + $0xac] ss:$12 sps:$4 sm:$0xff]  }
  0x50   :  { %104 = vperm.xlu0 %3491, %v93_v2   ;;  %v3516_v18 = vld [vmem:[#allocation2 + $0xa8] ss:$12 sps:$4 sm:$0xff]   ;;  %v3517_v19 = vld [vmem:[#allocation2 + $0xc4] ss:$12 sps:$4 sm:$0xff]   ;;  %v3520_v21 = vld [vmem:[#allocation2 + $0xc0] ss:$12 sps:$4 sm:$0xff]  }
  0x51   :  { %1394 = vmatpush1.bf16.msra.mxu0 %v3498_v6  ;;  %v3519_v20 = vld [vmem:[#allocation2 + $0xc8] ss:$12 sps:$4 sm:$0xff]   ;;  %v3524_v24 = vld [vmem:[#allocation2 + $0xe0] ss:$12 sps:$4 sm:$0xff]   ;;  %v3525_v25 = vld [vmem:[#allocation2 + $0xd8] ss:$12 sps:$4 sm:$0xff]  }
  0x52   :  { %1395 = vmatprep.subr.bf16.mxu0 %v3499_v7  ;;  %v3521_v22 = vld [vmem:[#allocation2 + $0x8] ss:$12 sps:$4 sm:$0xff]   ;;  %3224 = vmatprep.subr.bf16.mxu1 %v3519_v20  ;;  %v3526_v26 = vld [vmem:[#allocation2 + $0x20] ss:$12 sps:$4 sm:$0xff]   ;;  %v3529_v28 = vld [vmem:[#allocation2 + $0xf8] ss:$12 sps:$4 sm:$0xff]  }
  0x53   :  { %3225 = vmatpush3.bf16.msra.mxu1 %v3521_v22  ;;  %v3522_v23 = vld [vmem:[#allocation2 + $0xdc] ss:$12 sps:$4 sm:$0xff]   ;;  %v3527_v27 = vld [vmem:[#allocation2 + $0xf4] ss:$12 sps:$4 sm:$0xff]   ;;  %v3531_v30 = vld [vmem:[#allocation2 + $0x38] ss:$12 sps:$4 sm:$0xff]  }
  0x54   :  { %3226 = vmatprep.subr.bf16.mxu1 %v3524_v24  ;;  %v3530_v29 = vld [vmem:[#allocation2 + $0xf0] ss:$12 sps:$4 sm:$0xff]   ;;  %v3532_v31 = vld [vmem:[#allocation2 + $0x10c] ss:$12 sps:$4 sm:$0xff]   ;;  %v3535_v33 = vld [vmem:[#allocation2 + $0x108] ss:$12 sps:$4 sm:$0xff]  }
  0x55   :  { %1396 = vmatpush1.bf16.msra.mxu0 %v3501_v8  ;;  %v3534_v32 = vld [vmem:[#allocation2 + $0x110] ss:$12 sps:$4 sm:$0xff]   ;;  %v3539_v36 = vld [vmem:[#allocation2 + $0x128] ss:$12 sps:$4 sm:$0xff]   ;;  %v3540_v37 = vld [vmem:[#allocation2 + $0x120] ss:$12 sps:$4 sm:$0xff]  }
  0x56   :  { %1397 = vmatprep.subr.bf16.mxu0 %v3502_v9  ;;  %v3536_v34 = vld [vmem:[#allocation2 + $0x50] ss:$12 sps:$4 sm:$0xff]   ;;  %v3541_v38 = vld [vmem:[#allocation2 + $0x68] ss:$12 sps:$4 sm:$0xff]   ;;  %v3544_v40 = vld [vmem:[#allocation2 + $0x140] ss:$12 sps:$4 sm:$0xff]  }
  0x57   :  { %3227 = vmatpush3.bf16.msra.mxu1 %v3526_v26  ;;  %v3537_v35 = vld [vmem:[#allocation2 + $0x124] ss:$12 sps:$4 sm:$0xff]   ;;  %v3542_v39 = vld [vmem:[#allocation2 + $0x13c] ss:$12 sps:$4 sm:$0xff]   ;;  %v3546_v42 = vld [vmem:[#allocation2 + $0x80] ss:$12 sps:$4 sm:$0xff]  }
  0x58   :  { %3228 = vmatprep.subr.bf16.mxu1 %v3529_v28  ;;  %v3545_v41 = vld [vmem:[#allocation2 + $0x138] ss:$12 sps:$4 sm:$0xff]   ;;  %v3547_v43 = vld [vmem:[#allocation2 + $0x154] ss:$12 sps:$4 sm:$0xff]   ;;  %v3550_v45 = vld [vmem:[#allocation2 + $0x150] ss:$12 sps:$4 sm:$0xff]  }
  0x59   :  { %1398 = vmatpush1.bf16.msra.mxu0 %v3504_v10  ;;  %v3549_v44 = vld [vmem:[#allocation2 + $0x158] ss:$12 sps:$4 sm:$0xff]   ;;  %v3554_v48 = vld [vmem:[#allocation2 + $0x170] ss:$12 sps:$4 sm:$0xff]   ;;  %v3555_v51 = vld [vmem:[#allocation2 + $0x168] ss:$12 sps:$4 sm:$0xff]  }
  0x5a   :  { %1399 = vmatprep.subr.bf16.mxu0 %v3505_v11  ;;  %v3551_v46 = vld [vmem:[#allocation2 + $0x98] ss:$12 sps:$4 sm:$0xff]   ;;  %v94_v49 = vld [vmem:[%s4527_s0 + $0x10] sm:$0xff]  ;;  %v4029_v53 = vld [vmem:[%s4528_s1] ss:$0 sm:$0xff]  ;;  %s2976_s6 = sshll.u32 %s3901_s21, 4  ;;  %s2977_s6 = int_to_ptr.vmem [resolvable:$true] %s2976_s6 }
  0x5b   :  { %3229 = vmatpush3.bf16.msra.mxu1 %v3531_v30  ;;  %v3552_v47 = vld [vmem:[#allocation2 + $0x16c] ss:$12 sps:$4 sm:$0xff]   ;;  %v3556_v52 = vld [vmem:[#allocation2 + $0xb0] ss:$12 sps:$4 sm:$0xff]   ;;  %109 = vperm.xlu1 %3492, %v94_v49   ;;  %v3892_v3 = vmov 683565275   ;;  %p3858_p5 = scmp.lt.s32.totalorder %s2977_s6, %s2977_s6 }
  0x5c   :  { %3230 = vmatprep.subr.bf16.mxu1 %v3534_v32  ;;  %v95_v50 = vld [vmem:[%s4527_s0 + $0x18] sm:$0xff]  ;;  %v3893_v5 = vmov 2475754826   ;;  %v3894_v8 = vmov 2131351028   ;;  %s3853_s20 = scalar_lea.vmem %s2977_s6, 96 }
  0x5d   :  { %1400 = vmatpush1.bf16.msra.mxu0 %v3507_v12  ;;  %v3895_v11 = vmov 2102212464   ;;  %p3854_p4 = scmp.ne.s32.totalorder %s2977_s6, %s3853_s20  ;;  %p3859_p6 = scmp.lt.s32.totalorder %s3853_s20, %s3853_s20 }
  0x5e   :  { %1401 = vmatprep.subr.bf16.mxu0 %v3508_v13 }
  0x5f   :  { %3231 = vmatpush3.bf16.msra.mxu1 %v3536_v34  ;;  %114 = vperm.xlu1 %3492, %v95_v50   ;;  %p3860_p7 = por %p3859_p6, %p3858_p5 }
  0x60   :  { %3232 = vmatprep.subr.bf16.mxu1 %v3539_v36 }
  0x61   :  { %1402 = vmatpush1.bf16.msra.mxu0 %v3510_v14  ;;  %v3896_v14 = vmov 920167782   ;;  %p3861_p8 = pnand %p3860_p7, %p3854_p4 }
  0x62   :  { %1403 = vmatprep.subr.bf16.mxu0 %v3511_v15 }
  0x63   :  { %3233 = vmatpush3.bf16.msra.mxu1 %v3541_v38 }
  0x64   :  { %3234 = vmatprep.subr.bf16.mxu1 %v3544_v40 }
  0x65   :  { %1404 = vmatpush1.bf16.msra.mxu0 %v3513_v16 }
  0x66   :  { %1405 = vmatprep.subr.bf16.mxu0 %v3514_v17  ;;  %v3897_v17 = vmov 1326507024  }
  0x67   :  { %3235 = vmatpush3.bf16.msra.mxu1 %v3546_v42 }
  0x68   :  { %3236 = vmatprep.subr.bf16.mxu1 %v3549_v44 }
  0x69   :  { %1406 = vmatpush1.bf16.msra.mxu0 %v3516_v18 }
  0x6a   :  { %1407 = vmatprep.subr.bf16.mxu0 %v3517_v19 }
  0x6b   :  { %3237 = vmatpush3.bf16.msra.mxu1 %v3551_v46 }
  0x6c   :  { %3238 = vmatprep.subr.bf16.mxu1 %v3554_v48 }
  0x6d   :  { %1408 = vmatpush1.bf16.msra.mxu0 %v3520_v21 }
  0x6e   :  { %1409 = vmatprep.subr.bf16.mxu0 %v3522_v23 }
  0x6f   :  { %3239 = vmatpush3.bf16.msra.mxu1 %v3556_v52 }
  0x71   :  { %1410 = vmatpush1.bf16.msra.mxu0 %v3525_v25 }
  0x72   :  { %1411 = vmatprep.subr.bf16.mxu0 %v3527_v27 }
  0x75   :  { %1412 = vmatpush1.bf16.msra.mxu0 %v3530_v29 }
  0x76   :  { %1413 = vmatprep.subr.bf16.mxu0 %v3532_v31 }
  0x79   :  { %1414 = vmatpush1.bf16.msra.mxu0 %v3535_v33 }
  0x7a   :  { %1415 = vmatprep.subr.bf16.mxu0 %v3537_v35 }
  0x7d   :  { %1416 = vmatpush1.bf16.msra.mxu0 %v3540_v37 }
  0x7e   :  { %1417 = vmatprep.subr.bf16.mxu0 %v3542_v39 }
  0x81   :  { %1418 = vmatpush1.bf16.msra.mxu0 %v3545_v41 }
  0x82   :  { %1419 = vmatprep.subr.bf16.mxu0 %v3547_v43 }
  0x85   :  { %1420 = vmatpush1.bf16.msra.mxu0 %v3550_v45 }
  0x86   :  { %1421 = vmatprep.subr.bf16.mxu0 %v3552_v47 }
  0x89   :  { %1422 = vmatpush1.bf16.msra.mxu0 %v3555_v51  ;;  %v3559_v51 = vld [vmem:[#allocation5 + $0x4] ss:$12 sps:$4 sm:$0xff]  }
  0x8a   :  { %1896 = vmatprep.subr.bf16.mxu1 %v3559_v51  ;;  %v3581_v51 = vld [vmem:[#allocation5 + $0xc0] ss:$12 sps:$4 sm:$0xff]  }
  0xcb   :  { %v100_v54 = vpop.permute.xlu0 %99 }
  0xcc   :  { %v4032_v55 = vmul.f32 %v4029_v53, %v100_v54 }
  0xce   :  { %v130_v56 = vand.u32 2139095040, %v4032_v55  ;;  %v127_v60 = vand.u32 2147483647, %v4032_v55  ;;  %vm129_vm7 = vcmp.lt.s32.totalorder %v4032_v55, 0  ;;  %vm219_vm15 = vweird.f32 %v4032_v55 }
  0xd0   :  { %v131_v57 = vshrl.u32 %v130_v56, 23  ;;  %v134_v63 = vand.u32 8388607, %v127_v60  ;;  %vm128_vm8 = vcmp.le.f32.partialorder %v127_v60, 0.7853982 }
  0xd2   :  { %v2988_v58 = vadd.s32 4294967169, %v131_v57  ;;  %v135_v19 = vor.u32 8388608, %v134_v63 }
  0xd4   :  { %v137_v59 = vadd.s32 1, %v2988_v58  ;;  %v175_v33 = vshll.u32 %v135_v19, 8 }
  0xd6   :  { %vm138_vm0 = vcmp.gt.s32.totalorder %v137_v59, 0 }
  0xd7   :  { %v139_v61 = vsel %vm138_vm0, %v137_v59, 0 }
  0xd8   :  { %v141_v62 = vand.u32 31, %v139_v61  ;;  %v140_v2 = vshrl.u32 %v139_v61, 5 }
  0xda   :  { %v142_v1 = vsub.s32 32, %v141_v62  ;;  %v144_v4 = vshll.u32 %v3892_v3, %v141_v62  ;;  %v147_v6 = vshll.u32 %v3893_v5, %v141_v62  ;;  %v150_v10 = vshll.u32 %v3894_v8, %v141_v62 }
  0xdb   :  { %v153_v13 = vshll.u32 %v3895_v11, %v141_v62  ;;  %v156_v16 = vshll.u32 %v3896_v14, %v141_v62  ;;  %vm159_vm1 = vcmp.lt.s32.totalorder %v140_v2, 1  ;;  %vm162_vm2 = vcmp.lt.s32.totalorder %v140_v2, 4 }
  0xdc   :  { %v145_v7 = vshrl.u32 %v3893_v5, %v142_v1  ;;  %v148_v9 = vshrl.u32 %v3894_v8, %v142_v1  ;;  %v151_v12 = vshrl.u32 %v3895_v11, %v142_v1  ;;  %v154_v15 = vshrl.u32 %v3896_v14, %v142_v1 }
  0xdd   :  { %v157_v18 = vshrl.u32 %v3897_v17, %v142_v1  ;;  %v143_v28 = vshrl.u32 %v3892_v3, %v142_v1  ;;  %vm161_vm3 = vcmp.lt.s32.totalorder %v140_v2, 3  ;;  %vm160_vm4 = vcmp.lt.s32.totalorder %v140_v2, 2 }
  0xde   :  { %v146_v20 = vor.u32 %v145_v7, %v144_v4  ;;  %v149_v21 = vor.u32 %v148_v9, %v147_v6  ;;  %v152_v22 = vor.u32 %v151_v12, %v150_v10  ;;  %v155_v23 = vor.u32 %v154_v15, %v153_v13 }
  0xdf   :  { %v158_v24 = vor.u32 %v157_v18, %v156_v16 }
  0xe0   :  { %v164_v25 = vsel %vm162_vm2, %v152_v22, 2102212464  ;;  %v167_v26 = vsel %vm159_vm1, %v146_v20, %v149_v21  ;;  %v171_v27 = vsel %vm159_vm1, %v149_v21, %v152_v22  ;;  %v168_v29 = vsel %vm162_vm2, %v155_v23, 920167782 }
  0xe1   :  { %v172_v30 = vsel %vm162_vm2, %v158_v24, 1326507024  ;;  %v169_v31 = vsel %vm161_vm3, %v152_v22, %v168_v29  ;;  %v163_v34 = vsel %vm159_vm1, %v143_v28, %v146_v20  ;;  %v165_v35 = vsel %vm161_vm3, %v149_v21, %v164_v25 }
  0xe2   :  { %v173_v32 = vsel %vm161_vm3, %v155_v23, %v172_v30  ;;  %v170_v36 = vsel %vm160_vm4, %v167_v26, %v169_v31  ;;  %v166_v42 = vsel %vm160_vm4, %v163_v34, %v165_v35 }
  0xe3   :  { %v174_v37 = vsel %vm160_vm4, %v171_v27, %v173_v32  ;;  %v4052_v40 = vmul.u32.u64.low %v175_v33, %v170_v36  ;;  %v4053_v41 = vmul.u32.u64.high %v175_v33, %v170_v36, %v4052_v40  ;;  %v182_v44 = vmul.u32 %v175_v33, %v166_v42  ;;  %v3566_v42 = vld [vmem:[#allocation5 + $0x48] ss:$12 sps:$4 sm:$0xff]  }
  0xe4   :  { %v4049_v38 = vmul.u32.u64.low %v175_v33, %v174_v37  ;;  %v4050_v39 = vmul.u32.u64.high %v175_v33, %v174_v37, %v4049_v38  ;;  %v3557_v37 = vld [vmem:[#allocation5] ss:$12 sps:$4 sm:$0xff]  }
  0xe5   :  { %v185_v43 = vadd.s32 1, %v4053_v41  ;;  %v3562_v38 = vld [vmem:[#allocation5 + $0x1c] ss:$12 sps:$4 sm:$0xff]  }
  0xe6   :  { %vm184_vm5 = vc.u32 %v4050_v39, %v4052_v40  ;;  %v183_v59 = vadd.s32 %v4052_v40, %v4050_v39  ;;  %v3560_v39 = vld [vmem:[#allocation5 + $0x18] ss:$12 sps:$4 sm:$0xff]   ;;  %v3565_v40 = vld [vmem:[#allocation5 + $0x34] ss:$12 sps:$4 sm:$0xff]  }
  0xe7   :  { %v186_v45 = vsel %vm184_vm5, %v185_v43, %v4053_v41  ;;  %v3568_v41 = vld [vmem:[#allocation5 + $0x4c] ss:$12 sps:$4 sm:$0xff]   ;;  %v3571_v43 = vld [vmem:[#allocation5 + $0x64] ss:$12 sps:$4 sm:$0xff]  }
  0xe8   :  { %v187_v46 = vadd.s32 %v186_v45, %v182_v44  ;;  %v3569_v44 = vld [vmem:[#allocation5 + $0x60] ss:$12 sps:$4 sm:$0xff]   ;;  %v3574_v45 = vld [vmem:[#allocation5 + $0x7c] ss:$12 sps:$4 sm:$0xff]  }
  0xea   :  { %v188_v47 = vadd.s32 536870912, %v187_v46 }
  0xec   :  { %v189_v48 = vshrl.u32 %v188_v47, 30  ;;  %v3577_v47 = vld [vmem:[#allocation5 + $0x94] ss:$12 sps:$4 sm:$0xff]  }
  0xee   :  { %v190_v49 = vshll.u32 %v189_v48, 30  ;;  %v213_v13 = vsub.s32 4, %v189_v48 }
  0xf0   :  { %v191_v50 = vsub.s32 %v187_v46, %v190_v49  ;;  %v214_v18 = vsel %vm129_vm7, %v213_v13, %v189_v48  ;;  %v3572_v46 = vld [vmem:[#allocation5 + $0x78] ss:$12 sps:$4 sm:$0xff]   ;;  %v3578_v49 = vld [vmem:[#allocation5 + $0xa8] ss:$12 sps:$4 sm:$0xff]  }
  0xf1   :  { %v216_v20 = vsel %vm128_vm8, 0, %v214_v18  ;;  %v3580_v48 = vld [vmem:[#allocation5 + $0xac] ss:$12 sps:$4 sm:$0xff]  }
  0xf2   :  { %v193_v52 = vsub.s32 0, %v191_v50  ;;  %v632_v21 = vadd.s32 3, %v216_v20  ;;  %v220_v22 = vand.u32 3, %v216_v20  ;;  %v3605_v18 = vld [vmem:[#allocation5 + $0x120] ss:$12 sps:$4 sm:$0xff]  }
  0xf3   :  { %v3608_v20 = vld [vmem:[#allocation5 + $0x1e0] ss:$12 sps:$4 sm:$0xff]  }
  0xf4   :  { %v2989_v54 = vmin.u32 %v193_v52, %v191_v50  ;;  %v633_v23 = vand.u32 3, %v632_v21  ;;  %vm225_vm9 = vcmp.eq.s32.totalorder %v220_v22, 2  ;;  %vm222_vm11 = vcmp.eq.s32.totalorder %v220_v22, 0  ;;  %v3586_v52 = vld [vmem:[#allocation5 + $0x184] ss:$12 sps:$4 sm:$0xff]  }
  0xf5   :  { %vm221_vm13 = vcmp.lt.s32.totalorder %v220_v22, 2  ;;  %1937 = vmatprep.subr.bf16.mxu0 %v3586_v52 }
  0xf6   :  { %v195_v56 = vclz %v2989_v54  ;;  %vm638_vm10 = vcmp.eq.s32.totalorder %v633_v23, 2  ;;  %vm635_vm12 = vcmp.eq.s32.totalorder %v633_v23, 0  ;;  %vm634_vm14 = vcmp.lt.s32.totalorder %v633_v23, 2  ;;  %v3584_v54 = vld [vmem:[#allocation5 + $0x180] ss:$12 sps:$4 sm:$0xff]  }
  0xf7   :  { %v3613_v23 = vld [vmem:[#allocation5 + $0x13c] ss:$12 sps:$4 sm:$0xff]  }
  0xf8   :  { %v2990_v57 = vadd.s32 4294967294, %v195_v56  ;;  %v3589_v56 = vld [vmem:[#allocation5 + $0xdc] ss:$12 sps:$4 sm:$0xff]  }
  0xfa   :  { %vm2991_vm6 = vcmp.lt.s32.totalorder %v2990_v57, 0 }
  0xfb   :  { %v198_v58 = vsel %vm2991_vm6, 0, %v2990_v57  ;;  %v3587_v57 = vld [vmem:[#allocation5 + $0xd8] ss:$12 sps:$4 sm:$0xff]  }
  0xfc   :  { %v199_v61 = vsub.s32 32, %v198_v58  ;;  %v203_v62 = vsub.s32 4294967266, %v198_v58  ;;  %v200_v63 = vshll.u32 %v191_v50, %v198_v58  ;;  %v3583_v50 = vld [vmem:[#allocation5 + $0xc4] ss:$12 sps:$4 sm:$0xff]   ;;  %v3592_v58 = vld [vmem:[#allocation5 + $0x19c] ss:$12 sps:$4 sm:$0xff]  }
  0xfe   :  { %v201_v1 = vshrl.u32 %v183_v59, %v199_v61  ;;  %v204_v2 = vadd.s32 127, %v203_v62  ;;  %v3590_v59 = vld [vmem:[#allocation5 + $0x198] ss:$12 sps:$4 sm:$0xff]   ;;  %v105_v61 = vpop.permute.xlu0 %104  ;;  %v3595_v62 = vld [vmem:[#allocation5 + $0xf4] ss:$12 sps:$4 sm:$0xff]  }
 0x100   :  { %v202_v4 = vor.u32 %v201_v1, %v200_v63  ;;  %v205_v6 = vshll.u32 %v204_v2, 23  ;;  %v3593_v63 = vld [vmem:[#allocation5 + $0xf0] ss:$12 sps:$4 sm:$0xff]   ;;  %v3598_v1 = vld [vmem:[#allocation5 + $0x1b4] ss:$12 sps:$4 sm:$0xff]  }
 0x101   :  { %v3596_v2 = vld [vmem:[#allocation5 + $0x1b0] ss:$12 sps:$4 sm:$0xff]  }
 0x102   :  { %v206_v7 = vor.u32 4788187, %v205_v6  ;;  %v209_v10 = vcvt.s32.f32 %v202_v4  ;;  %v4066_v4 = vmul.f32 %v4029_v53, %v105_v61  ;;  %v3601_v6 = vld [vmem:[#allocation5 + $0x10c] ss:$12 sps:$4 sm:$0xff]  }
 0x104   :  { %v207_v9 = vand.u32 2147483647, %v206_v7  ;;  %v3599_v7 = vld [vmem:[#allocation5 + $0x108] ss:$12 sps:$4 sm:$0xff]   ;;  %v233_v13 = vand.u32 2139095040, %v4066_v4 }
 0x106   :  { %v210_v12 = vmul.f32 %v209_v10, %v207_v9  ;;  %v3604_v9 = vld [vmem:[#allocation5 + $0x1cc] ss:$12 sps:$4 sm:$0xff]   ;;  %v110_v10 = vpop.permute.xlu1 %109  ;;  %v234_v21 = vshrl.u32 %v233_v13, 23 }
 0x108   :  { %v211_v15 = vxor.u32 2147483648, %v210_v12 }
 0x10a   :  { %v212_v16 = vsel %vm129_vm7, %v211_v15, %v210_v12  ;;  %v3602_v12 = vld [vmem:[#allocation5 + $0x1c8] ss:$12 sps:$4 sm:$0xff]   ;;  %v4070_v15 = vmul.f32 %v4029_v53, %v110_v10 }
 0x10b   :  { %v215_v19 = vsel %vm128_vm8, %v4032_v55, %v212_v16  ;;  %v3563_v55 = vld [vmem:[#allocation5 + $0x30] ss:$12 sps:$4 sm:$0xff]  }
 0x10c   :  { %3725 = vcosq.f32 %v215_v19  ;;  %v3607_v16 = vld [vmem:[#allocation5 + $0x124] ss:$12 sps:$4 sm:$0xff]   ;;  %v336_v22 = vand.u32 2139095040, %v4070_v15 }
 0x10d   :  { %3727 = vsinq.f32 %v215_v19  ;;  %v3610_v19 = vld [vmem:[#allocation5 + $0x1e4] ss:$12 sps:$4 sm:$0xff]  }
 0x116   :  { %v3726_v24 = vpop.eup %3725 }
 0x117   :  { %v3728_v25 = vpop.eup %3727  ;;  %v226_v26 = vxor.u32 2147483648, %v3726_v24 }
 0x118   :  { %v223_v27 = vxor.u32 2147483648, %v3728_v25 }
 0x119   :  { %v227_v28 = vsel %vm225_vm9, %v226_v26, %v3728_v25  ;;  %v640_v29 = vsel %vm638_vm10, %v226_v26, %v3728_v25  ;;  %v3616_v25 = vld [vmem:[#allocation5 + $0x1fc] ss:$12 sps:$4 sm:$0xff]   ;;  %v3614_v26 = vld [vmem:[#allocation5 + $0x1f8] ss:$12 sps:$4 sm:$0xff]  }
 0x11a   :  { %v224_v60 = vsel %vm222_vm11, %v3726_v24, %v223_v27  ;;  %v637_v30 = vsel %vm635_vm12, %v3726_v24, %v223_v27  ;;  %v3611_v24 = vld [vmem:[#allocation5 + $0x138] ss:$12 sps:$4 sm:$0xff]   ;;  %v2992_v27 = vadd.s32 4294967169, %v234_v21 }
 0x11b   :  { %v228_v31 = vsel %vm221_vm13, %v224_v60, %v227_v28  ;;  %v641_v32 = vsel %vm634_vm14, %v637_v30, %v640_v29  ;;  %v337_v28 = vshrl.u32 %v336_v22, 23  ;;  %v3617_v29 = vld [vmem:[#allocation5 + $0x150] ss:$12 sps:$4 sm:$0xff]   ;;  %v3619_v60 = vld [vmem:[#allocation5 + $0x154] ss:$12 sps:$4 sm:$0xff]  }
 0x11c   :  { %v229_v33 = vsel %vm219_vm15, nan, %v228_v31  ;;  %v642_v34 = vsel %vm219_vm15, nan, %v641_v32  ;;  %v3620_v30 = vld [vmem:[#allocation5 + $0x210] ss:$12 sps:$4 sm:$0xff]   ;;  %v3622_v31 = vld [vmem:[#allocation5 + $0x214] ss:$12 sps:$4 sm:$0xff]  }
 0x11d   :  { %v1118_v35 = vpack.c.bf16 %v642_v34, %v642_v34  ;;  %v1117_v36 = vpack.c.bf16 %v229_v33, %v229_v33  ;;  %v3625_v32 = vld [vmem:[#allocation5 + $0x16c] ss:$12 sps:$4 sm:$0xff]   ;;  %v3623_v34 = vld [vmem:[#allocation5 + $0x168] ss:$12 sps:$4 sm:$0xff]  }
 0x11e   :  { %v3628_v33 = vld [vmem:[#allocation5 + $0x22c] ss:$12 sps:$4 sm:$0xff]  }
 0x11f   :  { %1423 = vmatprep.mubr.bf16.mxu0 %v1118_v35  ;;  %1464 = vmatprep.mubr.bf16.mxu1 %v1118_v35  ;;  %v240_v35 = vadd.s32 1, %v2992_v27 }
 0x120   :  { %1424 = vmatmul.mubr.bf16.vlgmr.msra.gmra.mrb[0].mxu0 %v1117_v36  ;;  %1465 = vmatmul.mubr.bf16.vlgmr.msra.gmra.mrb[0].mxu1 %v1117_v36  ;;  %v2996_v36 = vadd.s32 4294967169, %v337_v28 }
 0x121   :  { %1897 = vmatpush1.bf16.msra.mxu1 %v3557_v37  ;;  %1969 = vmatprep.mubr.bf16.mxu0 %v3891_v0  ;;  %v3575_v0 = vld [vmem:[#allocation5 + $0x90] ss:$12 sps:$4 sm:$0xff]   ;;  %v3626_v37 = vld [vmem:[#allocation5 + $0x228] ss:$12 sps:$4 sm:$0xff]   ;;  %vm241_vm0 = vcmp.gt.s32.totalorder %v240_v35, 0 }
 0x122   :  { %1898 = vmatprep.subr.bf16.mxu1 %v3562_v38  ;;  %1938 = vmatpush1.bf16.msra.mxu0 %v3584_v54  ;;  %v3629_v38 = vld [vmem:[#allocation5 + $0xc8] ss:$12 sps:$4 sm:$0xff]  }
 0x123   :  { %1939 = vmatprep.subr.bf16.mxu0 %v3592_v58 }
 0x125   :  { %1899 = vmatpush1.bf16.msra.mxu1 %v3560_v39  ;;  %v343_v39 = vadd.s32 1, %v2996_v36 }
 0x126   :  { %1900 = vmatprep.subr.bf16.mxu1 %v3565_v40  ;;  %1940 = vmatpush1.bf16.msra.mxu0 %v3590_v59  ;;  %v3898_v40 = vmov 0.0  }
 0x127   :  { %1941 = vmatprep.subr.bf16.mxu0 %v3598_v1  ;;  %vm344_vm1 = vcmp.gt.s32.totalorder %v343_v39, 0 }
 0x129   :  { %1901 = vmatpush1.bf16.msra.mxu1 %v3563_v55  ;;  %v242_v55 = vsel %vm241_vm0, %v240_v35, 0 }
 0x12a   :  { %1902 = vmatprep.subr.bf16.mxu1 %v3568_v41  ;;  %1942 = vmatpush1.bf16.msra.mxu0 %v3596_v2  ;;  %v244_v41 = vand.u32 31, %v242_v55  ;;  %v333_v2 = vand.u32 2147483647, %v4070_v15 }
 0x12b   :  { %1943 = vmatprep.subr.bf16.mxu0 %v3604_v9 }
 0x12c   :  { %v256_v52 = vshll.u32 %v3895_v11, %v244_v41  ;;  %v253_v59 = vshll.u32 %v3894_v8, %v244_v41  ;;  %v259_v61 = vshll.u32 %v3896_v14, %v244_v41 }
 0x12d   :  { %1903 = vmatpush1.bf16.msra.mxu1 %v3566_v42  ;;  %v345_v42 = vsel %vm344_vm1, %v343_v39, 0 }
 0x12e   :  { %1904 = vmatprep.subr.bf16.mxu1 %v3571_v43  ;;  %1944 = vmatpush1.bf16.msra.mxu0 %v3602_v12  ;;  %v4074_v43 = vsub.s32 32, %v244_v41 }
 0x12f   :  { %1945 = vmatprep.subr.bf16.mxu0 %v3610_v19 }
 0x130   :  { %v260_v54 = vshrl.u32 %v3897_v17, %v4074_v43  ;;  %v251_v58 = vshrl.u32 %v3894_v8, %v4074_v43 }
 0x131   :  { %1905 = vmatpush1.bf16.msra.mxu1 %v3569_v44  ;;  %v347_v44 = vand.u32 31, %v345_v42 }
 0x132   :  { %1906 = vmatprep.subr.bf16.mxu1 %v3574_v45  ;;  %1946 = vmatpush1.bf16.msra.mxu0 %v3608_v20  ;;  %v230_v45 = vand.u32 2147483647, %v4066_v4  ;;  %v261_v10 = vor.u32 %v260_v54, %v259_v61 }
 0x133   :  { %1947 = vmatprep.subr.bf16.mxu0 %v3616_v25  ;;  %v359_v1 = vshll.u32 %v3895_v11, %v347_v44  ;;  %v350_v12 = vshll.u32 %v3892_v3, %v347_v44  ;;  %v353_v13 = vshll.u32 %v3893_v5, %v347_v44  ;;  %v356_v20 = vshll.u32 %v3894_v8, %v347_v44 }
 0x135   :  { %1907 = vmatpush1.bf16.msra.mxu1 %v3572_v46  ;;  %v115_v46 = vpop.permute.xlu1 %114 }
 0x136   :  { %1908 = vmatprep.subr.bf16.mxu1 %v3577_v47  ;;  %1948 = vmatpush1.bf16.msra.mxu0 %v3614_v26  ;;  %v257_v47 = vshrl.u32 %v3896_v14, %v4074_v43  ;;  %v340_v26 = vand.u32 8388607, %v333_v2 }
 0x137   :  { %1949 = vmatprep.subr.bf16.mxu0 %v3622_v31 }
 0x139   :  { %1909 = vmatpush1.bf16.msra.mxu1 %v3575_v0  ;;  %v4079_v0 = vsub.s32 32, %v347_v44 }
 0x13a   :  { %1910 = vmatprep.subr.bf16.mxu1 %v3580_v48  ;;  %1950 = vmatpush1.bf16.msra.mxu0 %v3620_v30  ;;  %v4083_v48 = vand.u32 8388607, %v230_v45 }
 0x13b   :  { %1951 = vmatprep.subr.bf16.mxu0 %v3628_v33  ;;  %v363_v9 = vshrl.u32 %v3897_v17, %v4079_v0  ;;  %v354_v19 = vshrl.u32 %v3894_v8, %v4079_v0  ;;  %v357_v21 = vshrl.u32 %v3895_v11, %v4079_v0 }
 0x13c   :  { %v238_v28 = vor.u32 8388608, %v4083_v48 }
 0x13d   :  { %1911 = vmatpush1.bf16.msra.mxu1 %v3578_v49  ;;  %v4085_v49 = vshrl.u32 %v242_v55, 5  ;;  %v358_v33 = vor.u32 %v357_v21, %v356_v20 }
 0x13e   :  { %1912 = vmatprep.subr.bf16.mxu1 %v3583_v50  ;;  %1952 = vmatpush1.bf16.msra.mxu0 %v3626_v37  ;;  %v247_v50 = vshll.u32 %v3892_v3, %v244_v41  ;;  %v341_v37 = vor.u32 8388608, %v340_v26 }
 0x13f   :  { %3246 = vmatprep.subr.bf16.mxu0 %v3629_v38  ;;  %vm265_vm2 = vcmp.lt.s32.totalorder %v4085_v49, 4  ;;  %vm262_vm4 = vcmp.lt.s32.totalorder %v4085_v49, 1  ;;  %vm264_vm5 = vcmp.lt.s32.totalorder %v4085_v49, 3  ;;  %vm263_vm8 = vcmp.lt.s32.totalorder %v4085_v49, 2 }
 0x140   :  { %v275_v30 = vsel %vm265_vm2, %v261_v10, 1326507024 }
 0x141   :  { %1913 = vmatpush1.bf16.msra.mxu1 %v3581_v51  ;;  %v250_v51 = vshll.u32 %v3893_v5, %v244_v41 }
 0x142   :  { %1914 = vmatprep.subr.bf16.mxu1 %v3589_v56  ;;  %v4093_v56 = vmul.f32 %v4029_v53, %v115_v46  ;;  %v360_v53 = vshrl.u32 %v3896_v14, %v4079_v0 }
 0x144   :  { %v361_v25 = vor.u32 %v360_v53, %v359_v1 }
 0x145   :  { %1915 = vmatpush1.bf16.msra.mxu1 %v3587_v57  ;;  %v248_v57 = vshrl.u32 %v3893_v5, %v4074_v43 }
 0x146   :  { %1916 = vmatprep.subr.bf16.mxu1 %v3595_v62  ;;  %v254_v62 = vshrl.u32 %v3895_v11, %v4074_v43 }
 0x147   :  { %v249_v22 = vor.u32 %v248_v57, %v247_v50 }
 0x149   :  { %1917 = vmatpush1.bf16.msra.mxu1 %v3593_v63  ;;  %v258_v63 = vor.u32 %v257_v47, %v256_v52  ;;  %v381_v52 = vshll.u32 %v341_v37, 8 }
 0x14a   :  { %1918 = vmatprep.subr.bf16.mxu1 %v3601_v6  ;;  %v4107_v6 = vshrl.u32 %v345_v42, 5 }
 0x14b   :  { %v276_v55 = vsel %vm264_vm5, %v258_v63, %v275_v30 }
 0x14c   :  { %vm368_vm3 = vcmp.lt.s32.totalorder %v4107_v6, 4  ;;  %vm365_vm6 = vcmp.lt.s32.totalorder %v4107_v6, 1  ;;  %vm367_vm7 = vcmp.lt.s32.totalorder %v4107_v6, 3  ;;  %vm366_vm9 = vcmp.lt.s32.totalorder %v4107_v6, 2 }
 0x14d   :  { %1919 = vmatpush1.bf16.msra.mxu1 %v3599_v7  ;;  %v362_v7 = vshll.u32 %v3896_v14, %v347_v44  ;;  %v436_v6 = vand.u32 2147483647, %v4093_v56 }
 0x14e   :  { %1920 = vmatprep.subr.bf16.mxu1 %v3607_v16  ;;  %v439_v16 = vand.u32 2139095040, %v4093_v56 }
 0x14f   :  { %v364_v27 = vor.u32 %v363_v9, %v362_v7  ;;  %v349_v7 = vshrl.u32 %v3892_v3, %v4079_v0 }
 0x151   :  { %1921 = vmatpush1.bf16.msra.mxu1 %v3605_v18  ;;  %v351_v18 = vshrl.u32 %v3893_v5, %v4079_v0  ;;  %v378_v38 = vsel %vm368_vm3, %v364_v27, 1326507024 }
 0x152   :  { %1922 = vmatprep.subr.bf16.mxu1 %v3613_v23  ;;  %v252_v23 = vor.u32 %v251_v58, %v250_v51  ;;  %v379_v48 = vsel %vm367_vm7, %v361_v25, %v378_v38  ;;  %v278_v51 = vshll.u32 %v238_v28, 8 }
 0x153   :  { %v352_v31 = vor.u32 %v351_v18, %v350_v12 }
 0x154   :  { %v270_v35 = vsel %vm262_vm4, %v249_v22, %v252_v23 }
 0x155   :  { %1923 = vmatpush1.bf16.msra.mxu1 %v3611_v24  ;;  %v255_v24 = vor.u32 %v254_v62, %v253_v59  ;;  %v369_v20 = vsel %vm365_vm6, %v349_v7, %v352_v31 }
 0x156   :  { %1924 = vmatprep.subr.bf16.mxu1 %v3619_v60  ;;  %v440_v60 = vshrl.u32 %v439_v16, 23  ;;  %v246_v16 = vshrl.u32 %v3892_v3, %v4074_v43 }
 0x157   :  { %v274_v39 = vsel %vm262_vm4, %v252_v23, %v255_v24  ;;  %v267_v12 = vsel %vm265_vm2, %v255_v24, 2102212464 }
 0x158   :  { %v3000_v41 = vadd.s32 4294967169, %v440_v60  ;;  %v277_v50 = vsel %vm263_vm8, %v274_v39, %v276_v55  ;;  %v268_v0 = vsel %vm264_vm5, %v252_v23, %v267_v12 }
 0x159   :  { %1925 = vmatpush1.bf16.msra.mxu1 %v3617_v29  ;;  %v271_v29 = vsel %vm265_vm2, %v258_v63, 920167782  ;;  %v4169_v62 = vmul.u32.u64.low %v278_v51, %v277_v50  ;;  %v4170_v63 = vmul.u32.u64.high %v278_v51, %v277_v50, %v4169_v62 }
 0x15a   :  { %1926 = vmatprep.subr.bf16.mxu1 %v3625_v32  ;;  %v355_v32 = vor.u32 %v354_v19, %v353_v13  ;;  %v272_v36 = vsel %vm264_vm5, %v255_v24, %v271_v29  ;;  %v446_v57 = vadd.s32 1, %v3000_v41  ;;  %v370_v13 = vsel %vm368_vm3, %v358_v33, 2102212464 }
 0x15b   :  { %v273_v46 = vsel %vm263_vm8, %v270_v35, %v272_v36  ;;  %v266_v19 = vsel %vm262_vm4, %v246_v16, %v249_v22  ;;  %vm335_vm4 = vcmp.lt.s32.totalorder %v4070_v15, 0  ;;  %vm232_vm5 = vcmp.lt.s32.totalorder %v4066_v4, 0 }
 0x15c   :  { %v373_v42 = vsel %vm365_vm6, %v352_v31, %v355_v32  ;;  %v377_v47 = vsel %vm365_vm6, %v355_v32, %v358_v33  ;;  %v4163_v58 = vmul.u32.u64.low %v278_v51, %v273_v46  ;;  %v4164_v59 = vmul.u32.u64.high %v278_v51, %v273_v46, %v4163_v58 }
 0x15d   :  { %1927 = vmatpush1.bf16.msra.mxu1 %v3623_v34  ;;  %v374_v34 = vsel %vm368_vm3, %v361_v25, 920167782  ;;  %v380_v61 = vsel %vm366_vm9, %v377_v47, %v379_v48  ;;  %vm447_vm10 = vcmp.gt.s32.totalorder %v446_v57, 0  ;;  %v371_v21 = vsel %vm367_vm7, %v355_v32, %v370_v13 }
 0x15e   :  { %3370 = vmatprep.subr.bf16.mxu1 %v3898_v40  ;;  %v375_v44 = vsel %vm367_vm7, %v358_v33, %v374_v34  ;;  %v4178_v9 = vmul.u32.u64.low %v381_v52, %v380_v61  ;;  %v4179_v10 = vmul.u32.u64.high %v381_v52, %v380_v61, %v4178_v9  ;;  %v448_v18 = vsel %vm447_vm10, %v446_v57, 0 }
 0x15f   :  { %v376_v54 = vsel %vm366_vm9, %v373_v42, %v375_v44  ;;  %v288_v24 = vadd.s32 1, %v4164_v59  ;;  %vm287_vm11 = vc.u32 %v4170_v63, %v4163_v58  ;;  %v450_v25 = vand.u32 31, %v448_v18 }
 0x160   :  { %v4172_v1 = vmul.u32.u64.low %v381_v52, %v376_v54  ;;  %v4173_v53 = vmul.u32.u64.high %v381_v52, %v376_v54, %v4172_v1  ;;  %v269_v43 = vsel %vm263_vm8, %v266_v19, %v268_v0  ;;  %v372_v22 = vsel %vm366_vm9, %v369_v20, %v371_v21 }
 0x161   :  { %v289_v26 = vsel %vm287_vm11, %v288_v24, %v4164_v59  ;;  %v285_v27 = vmul.u32 %v278_v51, %v269_v43  ;;  %v388_v28 = vmul.u32 %v381_v52, %v372_v22  ;;  %v451_v29 = vsub.s32 32, %v450_v25 }
 0x162   :  { %v391_v23 = vadd.s32 1, %v4173_v53  ;;  %vm390_vm12 = vc.u32 %v4179_v10, %v4172_v1  ;;  %v462_v49 = vshll.u32 %v3895_v11, %v450_v25  ;;  %v449_v33 = vshrl.u32 %v448_v18, 5 }
 0x163   :  { %v290_v30 = vadd.s32 %v289_v26, %v285_v27  ;;  %v463_v32 = vshrl.u32 %v3896_v14, %v451_v29  ;;  %v465_v34 = vshll.u32 %v3896_v14, %v450_v25  ;;  %v466_v35 = vshrl.u32 %v3897_v17, %v451_v29 }
 0x164   :  { %v392_v60 = vsel %vm390_vm12, %v391_v23, %v4173_v53  ;;  %v453_v37 = vshll.u32 %v3892_v3, %v450_v25  ;;  %v456_v38 = vshll.u32 %v3893_v5, %v450_v25  ;;  %v454_v39 = vshrl.u32 %v3893_v5, %v451_v29 }
 0x165   :  { %v393_v31 = vadd.s32 %v392_v60, %v388_v28  ;;  %v291_v36 = vadd.s32 536870912, %v290_v30  ;;  %v457_v55 = vshrl.u32 %v3894_v8, %v451_v29  ;;  %v459_v41 = vshll.u32 %v3894_v8, %v450_v25 }
 0x166   :  { %v460_v42 = vshrl.u32 %v3895_v11, %v451_v29  ;;  %v464_v46 = vor.u32 %v463_v32, %v462_v49  ;;  %v443_v14 = vand.u32 8388607, %v436_v6  ;;  %v467_v47 = vor.u32 %v466_v35, %v465_v34  ;;  %v1019_v35 = vld [vmem:[%s4530_s3] sm:$0x7] }
 0x167   :  { %v394_v44 = vadd.s32 536870912, %v393_v31  ;;  %vm471_vm13 = vcmp.lt.s32.totalorder %v449_v33, 4  ;;  %v4220_v17 = vshrl.u32 %v291_v36, 30  ;;  %v455_v48 = vor.u32 %v454_v39, %v453_v37 }
 0x168   :  { %v458_v50 = vor.u32 %v457_v55, %v456_v38  ;;  %v461_v51 = vor.u32 %v460_v42, %v459_v41  ;;  %vm468_vm14 = vcmp.lt.s32.totalorder %v449_v33, 1  ;;  %vm470_vm15 = vcmp.lt.s32.totalorder %v449_v33, 3 }
 0x169   :  { %v4222_v52 = vshrl.u32 %v394_v44, 30  ;;  %v477_v5 = vsel %vm471_vm13, %v464_v46, 920167782  ;;  %v444_v8 = vor.u32 8388608, %v443_v14  ;;  %v481_v11 = vsel %vm471_vm13, %v467_v47, 1326507024 }
 0x16a   :  { %v293_v54 = vshll.u32 %v4220_v17, 30  ;;  %vm469_vm0 = vcmp.lt.s32.totalorder %v449_v33, 2  ;;  %v476_v57 = vsel %vm468_vm14, %v455_v48, %v458_v50  ;;  %v478_v59 = vsel %vm470_vm15, %v461_v51, %v477_v5 }
 0x16b   :  { %v396_v61 = vshll.u32 %v4222_v52, 30  ;;  %v480_v62 = vsel %vm468_vm14, %v458_v50, %v461_v51  ;;  %v482_v53 = vsel %vm470_vm15, %v464_v46, %v481_v11  ;;  %v484_v7 = vshll.u32 %v444_v8, 8 }
 0x16c   :  { %v479_v9 = vsel %vm469_vm0, %v476_v57, %v478_v59  ;;  %v4233_v12 = vsub.s32 %v290_v30, %v293_v54  ;;  %v483_v13 = vsel %vm469_vm0, %v480_v62, %v482_v53  ;;  %v452_v0 = vshrl.u32 %v3892_v3, %v451_v29 }
 0x16d   :  { %v4236_v16 = vsub.s32 %v393_v31, %v396_v61  ;;  %v4238_v18 = vmul.u32.u64.low %v484_v7, %v479_v9  ;;  %v4239_v19 = vmul.u32.u64.high %v484_v7, %v479_v9, %v4238_v18  ;;  %v473_v25 = vsel %vm471_vm13, %v461_v51, 2102212464 }
 0x16e   :  { %v4243_v20 = vmul.u32.u64.low %v484_v7, %v483_v13  ;;  %v4244_v21 = vmul.u32.u64.high %v484_v7, %v483_v13, %v4243_v20  ;;  %v296_v24 = vsub.s32 0, %v4233_v12  ;;  %v1120_v22 = vlaneseq }
 0x16f   :  { %v399_v43 = vsub.s32 0, %v4236_v16  ;;  %v472_v23 = vsel %vm468_vm14, %v452_v0, %v455_v48  ;;  %v474_v26 = vsel %vm470_vm15, %v458_v50, %v473_v25  ;;  %v494_v29 = vadd.s32 1, %v4239_v19 }
 0x170   :  { %v2993_v27 = vmin.u32 %v296_v24, %v4233_v12  ;;  %v475_v3 = vsel %vm469_vm0, %v472_v23, %v474_v26  ;;  %v4255_v60 = vshrl.u32 %v1120_v22, 7  ;;  %vm493_vm1 = vc.u32 %v4244_v21, %v4238_v18 }
 0x171   :  { %v2997_v28 = vmin.u32 %v399_v43, %v4236_v16  ;;  %v491_v49 = vmul.u32 %v484_v7, %v475_v3  ;;  %v495_v32 = vsel %vm493_vm1, %v494_v29, %v4239_v19  ;;  %v389_v25 = vadd.s32 %v4172_v1, %v4179_v10 }
 0x172   :  { %v298_v30 = vclz %v2993_v27  ;;  %v1122_v34 = vsub.s32 0, %v4255_v60  ;;  %v1126_v33 = vsub.s32 1, %v4255_v60  ;;  %v1130_v39 = vsub.s32 2, %v4255_v60 }
 0x173   :  { %v401_v31 = vclz %v2997_v28  ;;  %v496_v38 = vadd.s32 %v495_v32, %v491_v49  ;;  %v286_v27 = vadd.s32 %v4163_v58, %v4170_v63  ;;  %vm4293_vm7 = vcmp.le.f32.partialorder %v333_v2, 0.7853982 }
 0x174   :  { %v2994_v36 = vadd.s32 4294967294, %v298_v30  ;;  %v1123_v55 = vrot.slane %v1019_v35, %v1122_v34  ;;  %v1127_v41 = vrot.slane %v1019_v35, %v1126_v33  ;;  %v1131_v14 = vrot.slane %v1019_v35, %v1130_v39 }
 0x175   :  { %v2998_v37 = vadd.s32 4294967294, %v401_v31  ;;  %v497_v42 = vadd.s32 536870912, %v496_v38  ;;  %vm4303_vm8 = vcmp.le.f32.partialorder %v230_v45, 0.7853982  ;;  %v3634_v45 = vld [vmem:[#allocation5 + $0x20] ss:$12 sps:$4 sm:$0xff]   ;;  %vm425_vm15 = vweird.f32 %v4070_v15 }
 0x176   :  { %vm2995_vm2 = vcmp.lt.s32.totalorder %v2994_v36, 0  ;;  %vm3899_vm9 = vmmov 0   ;;  %vm438_vm1 = vcmp.lt.s32.totalorder %v4093_v56, 0 }
 0x177   :  { %vm2999_vm3 = vcmp.lt.s32.totalorder %v2998_v37, 0  ;;  %v301_v51 = vsel %vm2995_vm2, 0, %v2994_v36  ;;  %v4272_v53 = vshrl.u32 %v497_v42, 30  ;;  %vm322_vm2 = vweird.f32 %v4066_v4 }
 0x178   :  { %v404_v57 = vsel %vm2999_vm3, 0, %v2998_v37  ;;  %v306_v13 = vsub.s32 4294967266, %v301_v51  ;;  %v302_v23 = vsub.s32 32, %v301_v51  ;;  %v303_v1 = vshll.u32 %v4233_v12, %v301_v51 }
 0x179   :  { %v409_v19 = vsub.s32 4294967266, %v404_v57  ;;  %v499_v20 = vshll.u32 %v4272_v53, 30  ;;  %v405_v43 = vsub.s32 32, %v404_v57  ;;  %v406_v3 = vshll.u32 %v4236_v16, %v404_v57 }
 0x17a   :  { %v307_v24 = vadd.s32 127, %v306_v13  ;;  %v304_v49 = vshrl.u32 %v286_v27, %v302_v23  ;;  %v3633_v23 = vld [vmem:[#allocation5 + $0x1a0] ss:$12 sps:$4 sm:$0xff]   ;;  %vm4378_vm3 = vcmp.le.f32.partialorder %v436_v6, 0.7853982 }
 0x17b   :  { %v410_v22 = vadd.s32 127, %v409_v19  ;;  %v4277_v26 = vsub.s32 %v496_v38, %v499_v20  ;;  %v407_v29 = vshrl.u32 %v389_v25, %v405_v43  ;;  %v3630_v19 = vld [vmem:[#allocation5 + $0x188] ss:$12 sps:$4 sm:$0xff]  }
 0x17c   :  { %v308_v28 = vshll.u32 %v307_v24, 23  ;;  %v305_v58 = vor.u32 %v304_v49, %v303_v1  ;;  %v3631_v24 = vld [vmem:[#allocation5 + $0x8] ss:$12 sps:$4 sm:$0xff]   ;;  %v3637_v49 = vld [vmem:[#allocation5 + $0x38] ss:$12 sps:$4 sm:$0xff]  }
 0x17d   :  { %v411_v30 = vshll.u32 %v410_v22, 23  ;;  %v502_v35 = vsub.s32 0, %v4277_v26 }
 0x17e   :  { %v309_v10 = vor.u32 4788187, %v308_v28  ;;  %v419_v28 = vsub.s32 4, %v4222_v52 }
 0x17f   :  { %v3001_v16 = vmin.u32 %v502_v35, %v4277_v26  ;;  %v492_v35 = vadd.s32 %v4238_v18, %v4244_v21 }
 0x180   :  { %v310_v42 = vand.u32 2147483647, %v309_v10  ;;  %v3638_v10 = vld [vmem:[#allocation5 + $0x110] ss:$12 sps:$4 sm:$0xff]  }
 0x1f3   :  { %v1425_v44 = vpop.f32.mrb[0].mxu0  ;;  %v3240_v46 = vpop.f32.mrb[0].mxu1 }
 0x1f4   :  { %v1426_v47 = vadd.f32 %v1425_v44, %v1123_v55  ;;  %v1427_v48 = vpop.f32.mrb[1].mxu0  ;;  %v3241_v50 = vpop.f32.mrb[1].mxu1  ;;  %v408_v55 = vor.u32 %v407_v29, %v406_v3  ;;  %v3635_v29 = vld [vmem:[#allocation5 + $0xf8] ss:$12 sps:$4 sm:$0xff]  }
 0x1f5   :  { %v1428_v5 = vadd.f32 %v1427_v48, %v1127_v41  ;;  %v3242_v8 = vadd.f32 %v3241_v50, %v3240_v46  ;;  %v1429_v11 = vpop.f32.mrb[2].mxu0  ;;  %v3243_v54 = vpop.f32.mrb[2].mxu1  ;;  %v412_v41 = vor.u32 4788187, %v411_v30  ;;  %v504_v48 = vclz %v3001_v16  ;;  %v3642_v16 = vld [vmem:[#allocation5 + $0x1e8] ss:$12 sps:$4 sm:$0xff]  }
 0x1f6   :  { %v3068_v59 = vmul.f32 -1.442695, %v1426_v47  ;;  %v1430_v61 = vpop.f32.mrb[3].mxu0  ;;  %v3244_v62 = vpop.f32.mrb[3].mxu1  ;;  %v415_v46 = vcvt.s32.f32 %v408_v55  ;;  %v316_v30 = vsub.s32 4, %v4220_v17 }
 0x1f7   :  { %v3069_v7 = vmul.f32 -1.442695, %v1428_v5  ;;  %v1467_v9 = vadd.f32 %v3242_v8, %v1131_v14  ;;  %v413_v44 = vand.u32 2147483647, %v412_v41  ;;  %v312_v14 = vcvt.s32.f32 %v305_v58  ;;  %v3641_v58 = vld [vmem:[#allocation5 + $0x128] ss:$12 sps:$4 sm:$0xff]  }
 0x1f8   :  { %3729 = vpow2.f32 %v3068_v59  ;;  %v3002_v51 = vadd.s32 4294967294, %v504_v48 }
 0x1f9   :  { %3731 = vpow2.f32 %v3069_v7  ;;  %v3070_v0 = vmul.f32 -1.442695, %v1467_v9  ;;  %v313_v50 = vmul.f32 %v312_v14, %v310_v42  ;;  %v416_v8 = vmul.f32 %v415_v46, %v413_v44  ;;  %v3643_v44 = vld [vmem:[#allocation5 + $0x68] ss:$12 sps:$4 sm:$0xff]  }
 0x1fa   :  { %vm3003_vm6 = vcmp.lt.s32.totalorder %v3002_v51, 0 }
 0x1fb   :  { %3733 = vpow2.f32 %v3070_v0  ;;  %v314_v54 = vxor.u32 2147483648, %v313_v50  ;;  %v417_v59 = vxor.u32 2147483648, %v416_v8  ;;  %v507_v22 = vsel %vm3003_vm6, 0, %v3002_v51 }
 0x1fc   :  { %v512_v3 = vsub.s32 4294967266, %v507_v22  ;;  %v509_v18 = vshll.u32 %v4277_v26, %v507_v22 }
 0x1fd   :  { %v315_v0 = vsel %vm232_vm5, %v314_v54, %v313_v50  ;;  %v3644_v50 = vld [vmem:[#allocation5 + $0x140] ss:$12 sps:$4 sm:$0xff]  }
 0x1fe   :  { %v318_v2 = vsel %vm4303_vm8, %v4066_v4, %v315_v0  ;;  %v513_v1 = vadd.s32 127, %v512_v3  ;;  %v3646_v54 = vld [vmem:[#allocation5 + $0x80] ss:$12 sps:$4 sm:$0xff]  }
 0x1ff   :  { %v3688_v4 = vld [vmem:[#allocation7 + $0x108] sm:$0xff]  }
 0x200   :  { %v514_v41 = vshll.u32 %v513_v1, 23 }
 0x202   :  { %v3730_v31 = vpop.eup %3729  ;;  %v515_v48 = vor.u32 4788187, %v514_v41  ;;  %v3660_v41 = vld [vmem:[#allocation7 + $0x8] sm:$0xff]  }
 0x203   :  { %v3732_v32 = vpop.eup %3731  ;;  %v1481_v36 = vadd.f32 1.0, %v3730_v31  ;;  %v3636_v31 = vld [vmem:[#allocation5 + $0x1b8] ss:$12 sps:$4 sm:$0xff]  }
 0x204   :  { %v1482_v37 = vadd.f32 1.0, %v3732_v32  ;;  %v420_v32 = vsel %vm335_vm4, %v419_v28, %v4222_v52  ;;  %v3640_v52 = vld [vmem:[#allocation5 + $0x50] ss:$12 sps:$4 sm:$0xff]   ;;  %v3653_v28 = vld [vmem:[#allocation7 + $0xc0] sm:$0xff]  }
 0x205   :  { %v3734_v38 = vpop.eup %3733  ;;  %3735 = vrcp.f32 %v1481_v36  ;;  %v508_v36 = vsub.s32 32, %v507_v22  ;;  %v4331_v55 = vsel %vm4293_vm7, 0, %v420_v32 }
 0x206   :  { %3737 = vrcp.f32 %v1482_v37  ;;  %v1483_v63 = vadd.f32 1.0, %v3734_v38  ;;  %v317_v37 = vsel %vm232_vm5, %v316_v30, %v4220_v17  ;;  %v3639_v38 = vld [vmem:[#allocation5 + $0x1d0] ss:$12 sps:$4 sm:$0xff]   ;;  %v840_v17 = vadd.s32 3, %v4331_v55  ;;  %v3654_v30 = vld [vmem:[#allocation7 + $0x40] sm:$0xff]  }
 0x207   :  { %v510_v21 = vshrl.u32 %v492_v35, %v508_v36  ;;  %v3656_v35 = vld [vmem:[#allocation7] sm:$0xff]  }
 0x208   :  { %3739 = vrcp.f32 %v1483_v63  ;;  %v4337_v63 = vsel %vm4303_vm8, 0, %v317_v37  ;;  %v3657_v37 = vld [vmem:[#allocation7 + $0xc8] sm:$0xff]  }
 0x209   :  { %3741 = vcosq.f32 %v318_v2  ;;  %v736_v26 = vadd.s32 3, %v4337_v63  ;;  %v511_v14 = vor.u32 %v510_v21, %v509_v18  ;;  %v3659_v21 = vld [vmem:[#allocation7 + $0x88] sm:$0xff]  }
 0x20f   :  { %v3736_v12 = vpop.eup %3735 }
 0x210   :  { %v3738_v11 = vpop.eup %3737  ;;  %v1490_v57 = vmul.f32 %v3736_v12, %v1426_v47  ;;  %v841_v12 = vand.u32 3, %v840_v17  ;;  %v3649_v47 = vld [vmem:[#allocation5 + $0x98] ss:$12 sps:$4 sm:$0xff]   ;;  %v522_v17 = vsub.s32 4, %v4272_v53 }
 0x211   :  { %v1491_v61 = vmul.f32 %v3738_v11, %v1428_v5  ;;  %v418_v5 = vsel %vm335_vm4, %v417_v59, %v416_v8  ;;  %v3645_v11 = vld [vmem:[#allocation5 + $0x200] ss:$12 sps:$4 sm:$0xff]   ;;  %v516_v59 = vand.u32 2147483647, %v515_v48  ;;  %v3667_v48 = vld [vmem:[#allocation7 + $0x98] sm:$0xff]  }
 0x212   :  { %v3740_v62 = vpop.eup %3739  ;;  %v4289_v20 = vpack.c.bf16 %v1490_v57, %v1490_v57  ;;  %v421_v27 = vsel %vm4293_vm7, %v4070_v15, %v418_v5  ;;  %v737_v57 = vand.u32 3, %v736_v26  ;;  %vm843_vm10 = vcmp.eq.s32.totalorder %v841_v12, 0 }
 0x213   :  { %v1494_v7 = vpack.c.bf16 %v1491_v61, %v1491_v61  ;;  %v1492_v13 = vmul.f32 %v3740_v62, %v1467_v9  ;;  %v3632_v9 = vld [vmem:[#allocation5 + $0xe0] ss:$12 sps:$4 sm:$0xff]   ;;  %3743 = vcosq.f32 %v421_v27  ;;  %v4340_v42 = vpop.eup %3741  ;;  %v518_v61 = vcvt.s32.f32 %v511_v14  ;;  %v3647_v62 = vld [vmem:[#allocation5 + $0x158] ss:$12 sps:$4 sm:$0xff]  }
 0x214   :  { %3745 = vsinq.f32 %v421_v27  ;;  %vm846_vm11 = vcmp.eq.s32.totalorder %v841_v12, 2  ;;  %v329_v0 = vxor.u32 2147483648, %v4340_v42  ;;  %vm739_vm12 = vcmp.eq.s32.totalorder %v737_v57, 0  ;;  %v3651_v27 = vld [vmem:[#allocation5 + $0x230] ss:$12 sps:$4 sm:$0xff]  }
 0x215   :  { %v4299_v25 = vpack.c.bf16 %v1492_v13, %v1492_v13  ;;  %1928 = vmatprep.mubr.bf16.mxu1 %v1494_v7  ;;  %3747 = vsinq.f32 %v318_v2  ;;  %vm742_vm13 = vcmp.eq.s32.totalorder %v737_v57, 2  ;;  %v519_v5 = vmul.f32 %v518_v61, %v516_v59  ;;  %v3666_v14 = vld [vmem:[#allocation7 + $0x58] sm:$0xff]   ;;  %v3671_v59 = vld [vmem:[#allocation7 + $0xa0] sm:$0xff]  }
 0x216   :  { %1929 = vmatmul.mubr.bf16.vlgmr.msra.gmra.mrb[4].mxu1 %v4289_v20  ;;  %vm842_vm14 = vcmp.lt.s32.totalorder %v841_v12, 2  ;;  %vm738_vm0 = vcmp.lt.s32.totalorder %v737_v57, 2  ;;  %v523_v26 = vsel %vm438_vm1, %v522_v17, %v4272_v53  ;;  %v3668_v12 = vld [vmem:[#allocation7 + $0x18] sm:$0xff]   ;;  %v426_v53 = vand.u32 3, %v4331_v55  ;;  %v3672_v61 = vld [vmem:[#allocation7 + $0x20] sm:$0xff]   ;;  %v3676_v55 = vld [vmem:[#allocation7 + $0x28] sm:$0xff]  }
 0x217   :  { %3371 = vmatpush3.bf16.msra.mxu1 %v3630_v19  ;;  %1970 = vmatmul.mubr.bf16.vlgmr.msra.gmra.mrb[4].mxu0 %v4299_v25  ;;  %v3694_v17 = vld [vmem:[#allocation7 + $0x120] sm:$0xff]  }
 0x218   :  { %3247 = vmatpush3.bf16.msra.mxu0 %v3631_v24  ;;  %2010 = vmatprep.mubr.bf16.mxu0 %v1494_v7  ;;  %v3648_v24 = vld [vmem:[#allocation5 + $0x218] ss:$12 sps:$4 sm:$0xff]   ;;  %vm428_vm4 = vcmp.eq.s32.totalorder %v426_v53, 0  ;;  %vm431_vm5 = vcmp.eq.s32.totalorder %v426_v53, 2 }
 0x219   :  { %3372 = vmatprep.subr.bf16.mxu1 %v3898_v40  ;;  %3248 = vmatprep.subr.bf16.mxu0 %v3632_v9  ;;  %v3650_v9 = vld [vmem:[#allocation5 + $0x170] ss:$12 sps:$4 sm:$0xff]  }
 0x21a   :  { %3386 = vmatprep.mubr.msk.bf16.mxu1 %vm3899_vm9, %v3898_v40 }
 0x21b   :  { %3373 = vmatpush3.bf16.msra.mxu1 %v3633_v23 }
 0x21c   :  { %3249 = vmatpush3.bf16.msra.mxu0 %v3634_v45  ;;  %3374 = vmatprep.subr.bf16.mxu1 %v3898_v40  ;;  %v3652_v45 = vld [vmem:[#allocation5 + $0xb0] ss:$12 sps:$4 sm:$0xff]  }
 0x21d   :  { %3250 = vmatprep.subr.bf16.mxu0 %v3635_v29  ;;  %v4344_v46 = vpop.eup %3743  ;;  %v520_v29 = vxor.u32 2147483648, %v519_v5 }
 0x21e   :  { %v4346_v8 = vpop.eup %3745  ;;  %v432_v13 = vxor.u32 2147483648, %v4344_v46 }
 0x21f   :  { %3375 = vmatpush3.bf16.msra.mxu1 %v3636_v31  ;;  %v4348_v51 = vpop.eup %3747  ;;  %v429_v7 = vxor.u32 2147483648, %v4346_v8 }
 0x220   :  { %3251 = vmatpush3.bf16.msra.mxu0 %v3637_v49  ;;  %3376 = vmatprep.subr.bf16.mxu1 %v3898_v40  ;;  %v326_v19 = vxor.u32 2147483648, %v4348_v51  ;;  %v848_v22 = vsel %vm846_vm11, %v432_v13, %v4346_v8  ;;  %v744_v23 = vsel %vm742_vm13, %v329_v0, %v4348_v51  ;;  %v3655_v49 = vld [vmem:[#allocation7 + $0x80] sm:$0xff]  }
 0x221   :  { %3252 = vmatprep.subr.bf16.mxu0 %v3638_v10  ;;  %v845_v43 = vsel %vm843_vm10, %v4344_v46, %v429_v7  ;;  %v521_v10 = vsel %vm438_vm1, %v520_v29, %v519_v5  ;;  %vm427_vm10 = vcmp.lt.s32.totalorder %v426_v53, 2  ;;  %v3702_v53 = vld [vmem:[#allocation8] sm:$0xff]  }
 0x222   :  { %v741_v2 = vsel %vm739_vm12, %v4340_v42, %v326_v19  ;;  %v849_v3 = vsel %vm842_vm14, %v845_v43, %v848_v22  ;;  %v524_v6 = vsel %vm4378_vm3, %v4093_v56, %v521_v10  ;;  %v3675_v22 = vld [vmem:[#allocation7 + $0xa8] sm:$0xff]   ;;  %vm528_vm14 = vweird.f32 %v4093_v56  ;;  %v3705_v56 = vld [vmem:[#allocation8 + $0x50] sm:$0xff]  }
 0x223   :  { %3377 = vmatpush3.bf16.msra.mxu1 %v3639_v38  ;;  %v745_v31 = vsel %vm738_vm0, %v741_v2, %v744_v23  ;;  %v850_v32 = vsel %vm425_vm15, nan, %v849_v3  ;;  %3749 = vcosq.f32 %v524_v6  ;;  %v3677_v2 = vld [vmem:[#allocation7 + $0xf0] sm:$0xff]  }
 0x224   :  { %3253 = vmatpush3.bf16.msra.mxu0 %v3640_v52  ;;  %3378 = vmatprep.subr.bf16.mxu1 %v3898_v40  ;;  %v746_v36 = vsel %vm322_vm2, nan, %v745_v31  ;;  %v2205_v38 = vpack.c.bf16 %v850_v32, %v850_v32  ;;  %v3658_v52 = vld [vmem:[#allocation7 + $0x48] sm:$0xff]   ;;  %3751 = vsinq.f32 %v524_v6  ;;  %v3678_v23 = vld [vmem:[#allocation7 + $0x70] sm:$0xff]   ;;  %v3691_v6 = vld [vmem:[#allocation7 + $0x158] sm:$0xff]  }
 0x225   :  { %3254 = vmatprep.subr.bf16.mxu0 %v3641_v58  ;;  %v2203_v18 = vpack.c.bf16 %v746_v36, %v746_v36  ;;  %v3661_v58 = vld [vmem:[#allocation7 + $0xd0] sm:$0xff]  }
 0x226   :  { %v3679_v3 = vld [vmem:[#allocation7 + $0xb0] sm:$0xff]  }
 0x227   :  { %3379 = vmatpush3.bf16.msra.mxu1 %v3642_v16  ;;  %v3664_v16 = vld [vmem:[#allocation7 + $0x10] sm:$0xff]  }
 0x228   :  { %3255 = vmatpush3.bf16.msra.mxu0 %v3643_v44  ;;  %3380 = vmatprep.subr.bf16.mxu1 %v3898_v40  ;;  %v3665_v44 = vld [vmem:[#allocation7 + $0xd8] sm:$0xff]   ;;  %v3680_v31 = vld [vmem:[#allocation7 + $0x30] sm:$0xff]  }
 0x229   :  { %3256 = vmatprep.subr.bf16.mxu0 %v3644_v50  ;;  %v4395_v50 = vsel %vm4378_vm3, 0, %v523_v26 }
 0x22a   :  { %v944_v57 = vadd.s32 3, %v4395_v50 }
 0x22b   :  { %3381 = vmatpush3.bf16.msra.mxu1 %v3645_v11  ;;  %v3669_v11 = vld [vmem:[#allocation7 + $0xe0] sm:$0xff]  }
 0x22c   :  { %3257 = vmatpush3.bf16.msra.mxu0 %v3646_v54  ;;  %3382 = vmatprep.subr.bf16.mxu1 %v3898_v40  ;;  %v3670_v54 = vld [vmem:[#allocation7 + $0x60] sm:$0xff]   ;;  %v945_v43 = vand.u32 3, %v944_v57 }
 0x22d   :  { %3258 = vmatprep.subr.bf16.mxu0 %v3647_v62  ;;  %v3673_v62 = vld [vmem:[#allocation7 + $0xe8] sm:$0xff]  }
 0x22e   :  { %vm947_vm7 = vcmp.eq.s32.totalorder %v945_v43, 0  ;;  %vm950_vm8 = vcmp.eq.s32.totalorder %v945_v43, 2  ;;  %vm946_vm12 = vcmp.lt.s32.totalorder %v945_v43, 2  ;;  %v3710_v43 = vld [vmem:[#allocation8 + $0x20] sm:$0xff]  }
 0x22f   :  { %3383 = vmatpush3.bf16.msra.mxu1 %v3648_v24  ;;  %v4399_v24 = vpop.eup %3749 }
 0x230   :  { %3259 = vmatpush3.bf16.msra.mxu0 %v3649_v47  ;;  %3384 = vmatprep.subr.bf16.mxu1 %v3898_v40  ;;  %v3674_v47 = vld [vmem:[#allocation7 + $0x68] sm:$0xff]   ;;  %v4401_v5 = vpop.eup %3751 }
 0x231   :  { %3260 = vmatprep.subr.bf16.mxu0 %v3650_v9  ;;  %v323_v9 = vand.u32 3, %v4337_v63  ;;  %v430_v63 = vsel %vm428_vm4, %v4344_v46, %v429_v7  ;;  %v3682_v7 = vld [vmem:[#allocation7 + $0x78] sm:$0xff]  }
 0x233   :  { %3385 = vmatpush3.bf16.msra.mxu1 %v3651_v27  ;;  %v532_v27 = vxor.u32 2147483648, %v4401_v5  ;;  %vm325_vm6 = vcmp.eq.s32.totalorder %v323_v9, 0  ;;  %vm328_vm11 = vcmp.eq.s32.totalorder %v323_v9, 2  ;;  %vm324_vm13 = vcmp.lt.s32.totalorder %v323_v9, 2  ;;  %v3709_v9 = vld [vmem:[#allocation8 + $0x60] sm:$0xff]  }
 0x234   :  { %3261 = vmatpush3.bf16.msra.mxu0 %v3652_v45  ;;  %3299 = vmatprep.subr.bf16.mxu1 %v3653_v28  ;;  %v535_v45 = vxor.u32 2147483648, %v4399_v24  ;;  %v433_v28 = vsel %vm431_vm5, %v432_v13, %v4346_v8  ;;  %v327_v29 = vsel %vm325_vm6, %v4340_v42, %v326_v19  ;;  %v3683_v13 = vld [vmem:[#allocation7 + $0xb8] sm:$0xff]  }
 0x235   :  { %3277 = vmatprep.subr.bf16.mxu0 %v3654_v30  ;;  %v330_v30 = vsel %vm328_vm11, %v329_v0, %v4348_v51  ;;  %v949_v46 = vsel %vm947_vm7, %v4399_v24, %v532_v27  ;;  %v434_v42 = vsel %vm427_vm10, %v430_v63, %v433_v28  ;;  %v3684_v19 = vld [vmem:[#allocation7 + $0x38] sm:$0xff]   ;;  %v4467_v63 = vld [vmem:[%s4532_s5] sm:$0x7] }
 0x236   :  { %3387 = vmatmul.mubr.bf16.vlgmr.msra.gmra.mrb[8].mxu1 %v4299_v25  ;;  %v3662_v25 = vld [vmem:[#allocation7 + $0x50] sm:$0xff]   ;;  %v952_v8 = vsel %vm950_vm8, %v535_v45, %v4401_v5  ;;  %v331_v51 = vsel %vm324_vm13, %v327_v29, %v330_v30  ;;  %v435_v32 = vsel %vm425_vm15, nan, %v434_v42  ;;  %v1500_v28 = vrot.slane %v4467_v63, %v1122_v34 }
 0x237   :  { %2011 = vmatmul.mubr.bf16.vlgmr.msra.gmra.mrb[8].mxu0 %v4289_v20  ;;  %3300 = vmatpush3.bf16.msra.mxu1 %v3655_v49  ;;  %v3663_v20 = vld [vmem:[#allocation7 + $0x90] sm:$0xff]   ;;  %v3681_v49 = vld [vmem:[#allocation7 + $0xf8] sm:$0xff]   ;;  %v953_v0 = vsel %vm946_vm12, %v949_v46, %v952_v8  ;;  %v332_v36 = vsel %vm322_vm2, nan, %v331_v51  ;;  %v2204_v10 = vpack.c.bf16 %v435_v32, %v435_v32 }
 0x238   :  { %2493 = vmatprep.mubr.bf16.mxu1 %v2205_v38  ;;  %3278 = vmatpush3.bf16.msra.mxu0 %v3656_v35  ;;  %v3685_v35 = vld [vmem:[#allocation7 + $0x140] sm:$0xff]   ;;  %v954_v1 = vsel %vm528_vm14, nan, %v953_v0  ;;  %v2202_v38 = vpack.c.bf16 %v332_v36, %v332_v36 }
 0x239   :  { %2357 = vmatprep.mubr.bf16.mxu0 %v2203_v18  ;;  %3301 = vmatprep.subr.bf16.mxu1 %v3657_v37  ;;  %v3686_v37 = vld [vmem:[#allocation7 + $0x100] sm:$0xff]   ;;  %v2207_v15 = vpack.c.bf16 %v954_v1, %v954_v1  ;;  %v3689_v18 = vld [vmem:[#allocation7 + $0x150] sm:$0xff]  }
 0x23a   :  { %3279 = vmatprep.subr.bf16.mxu0 %v3658_v52  ;;  %v3687_v52 = vld [vmem:[#allocation7 + $0x148] sm:$0xff]  }
 0x23b   :  { %3302 = vmatpush3.bf16.msra.mxu1 %v3659_v21  ;;  %v3690_v21 = vld [vmem:[#allocation7 + $0x110] sm:$0xff]  }
 0x23c   :  { %3280 = vmatpush3.bf16.msra.mxu0 %v3660_v41  ;;  %3303 = vmatprep.subr.bf16.mxu1 %v3661_v58  ;;  %v3692_v41 = vld [vmem:[#allocation7 + $0x118] sm:$0xff]   ;;  %v3693_v58 = vld [vmem:[#allocation7 + $0x160] sm:$0xff]  }
 0x23d   :  { %3281 = vmatprep.subr.bf16.mxu0 %v3662_v25  ;;  %v529_v25 = vand.u32 3, %v4395_v50  ;;  %v3699_v50 = vld [vmem:[#allocation7 + $0x178] sm:$0xff]  }
 0x23f   :  { %3304 = vmatpush3.bf16.msra.mxu1 %v3663_v20  ;;  %v3695_v20 = vld [vmem:[#allocation7 + $0x168] sm:$0xff]   ;;  %vm531_vm15 = vcmp.eq.s32.totalorder %v529_v25, 0  ;;  %vm534_vm0 = vcmp.eq.s32.totalorder %v529_v25, 2  ;;  %vm530_vm1 = vcmp.lt.s32.totalorder %v529_v25, 2 }
 0x240   :  { %3282 = vmatpush3.bf16.msra.mxu0 %v3664_v16  ;;  %3305 = vmatprep.subr.bf16.mxu1 %v3665_v44  ;;  %v3696_v16 = vld [vmem:[#allocation7 + $0x128] sm:$0xff]   ;;  %v3697_v44 = vld [vmem:[#allocation7 + $0x170] sm:$0xff]   ;;  %v533_v26 = vsel %vm531_vm15, %v4399_v24, %v532_v27  ;;  %v3715_v27 = vld [vmem:[#allocation8 + $0x78] sm:$0xff]  }
 0x241   :  { %3283 = vmatprep.subr.bf16.mxu0 %v3666_v14  ;;  %v536_v14 = vsel %vm534_vm0, %v535_v45, %v4401_v5  ;;  %v3706_v24 = vld [vmem:[#allocation8 + $0x10] sm:$0xff]   ;;  %v3708_v5 = vld [vmem:[#allocation8 + $0x18] sm:$0xff]  }
 0x242   :  { %v3716_v45 = vld [vmem:[#allocation8 + $0x38] sm:$0xff]  }
 0x243   :  { %3306 = vmatpush3.bf16.msra.mxu1 %v3667_v48  ;;  %v3698_v48 = vld [vmem:[#allocation7 + $0x130] sm:$0xff]  }
 0x244   :  { %3284 = vmatpush3.bf16.msra.mxu0 %v3668_v12  ;;  %3307 = vmatprep.subr.bf16.mxu1 %v3669_v11  ;;  %v537_v12 = vsel %vm530_vm1, %v533_v26, %v536_v14  ;;  %v3700_v11 = vld [vmem:[#allocation7 + $0x138] sm:$0xff]  }
 0x245   :  { %3285 = vmatprep.subr.bf16.mxu0 %v3670_v54  ;;  %v538_v54 = vsel %vm528_vm14, nan, %v537_v12 }
 0x246   :  { %v2206_v57 = vpack.c.bf16 %v538_v54, %v538_v54 }
 0x247   :  { %3308 = vmatpush3.bf16.msra.mxu1 %v3671_v59  ;;  %v3701_v59 = vld [vmem:[#allocation8 + $0x40] sm:$0xff]  }
 0x248   :  { %3286 = vmatpush3.bf16.msra.mxu0 %v3672_v61  ;;  %3309 = vmatprep.subr.bf16.mxu1 %v3673_v62  ;;  %v3703_v61 = vld [vmem:[#allocation8 + $0x48] sm:$0xff]  }
 0x249   :  { %3287 = vmatprep.subr.bf16.mxu0 %v3674_v47  ;;  %v3704_v62 = vld [vmem:[#allocation8 + $0x8] sm:$0xff]   ;;  %v3707_v47 = vld [vmem:[#allocation8 + $0x58] sm:$0xff]  }
 0x24b   :  { %3310 = vmatpush3.bf16.msra.mxu1 %v3675_v22  ;;  %v3711_v22 = vld [vmem:[#allocation8 + $0x68] sm:$0xff]  }
 0x24c   :  { %3288 = vmatpush3.bf16.msra.mxu0 %v3676_v55  ;;  %3311 = vmatprep.subr.bf16.mxu1 %v3677_v2  ;;  %v3712_v55 = vld [vmem:[#allocation8 + $0x28] sm:$0xff]   ;;  %v3713_v2 = vld [vmem:[#allocation8 + $0x70] sm:$0xff]  }
 0x24d   :  { %3289 = vmatprep.subr.bf16.mxu0 %v3678_v23  ;;  %v3714_v23 = vld [vmem:[#allocation8 + $0x30] sm:$0xff]  }
 0x24f   :  { %3312 = vmatpush3.bf16.msra.mxu1 %v3679_v3  ;;  %v1504_v3 = vrot.slane %v4467_v63, %v1126_v33 }
 0x250   :  { %3290 = vmatpush3.bf16.msra.mxu0 %v3680_v31  ;;  %3313 = vmatprep.subr.bf16.mxu1 %v3681_v49 }
 0x251   :  { %3291 = vmatprep.subr.bf16.mxu0 %v3682_v7 }
 0x253   :  { %3314 = vmatpush3.bf16.msra.mxu1 %v3683_v13 }
 0x254   :  { %3292 = vmatpush3.bf16.msra.mxu0 %v3684_v19  ;;  %3390 = vmatprep.subr.bf16.mxu1 %v3898_v40 }
 0x255   :  { %3321 = vmatprep.subr.bf16.mxu0 %v3685_v35 }
 0x256   :  { %2494 = vmatmul.mubr.bf16.vlgmr.msra.gmra.mrb[12].mxu1 %v2204_v10 }
 0x257   :  { %2358 = vmatmul.mubr.bf16.vlgmr.msra.gmra.mrb[12].mxu0 %v2202_v38  ;;  %3406 = vmatprep.mubr.msk.bf16.mxu1 %vm3899_vm9, %v3898_v40 }
 0x258   :  { %3322 = vmatpush3.bf16.msra.mxu0 %v3686_v37  ;;  %2629 = vmatprep.mubr.bf16.mxu0 %v2207_v15  ;;  %v3144_v37 = vld [vmem:[%s4534_s7 + $0x1] ss:$0 sm:$0xff]  ;;  %v3143_v15 = vld [vmem:[%s4534_s7] ss:$0 sm:$0xff] }
 0x259   :  { %3323 = vmatprep.subr.bf16.mxu0 %v3687_v52  ;;  %3391 = vmatpush3.bf16.msra.mxu1 %v3702_v53  ;;  %v3145_v53 = vld [vmem:[%s4534_s7 + $0x2] ss:$0 sm:$0xff] }
 0x25a   :  { %3392 = vmatprep.subr.bf16.mxu1 %v3898_v40 }
 0x25c   :  { %3324 = vmatpush3.bf16.msra.mxu0 %v3688_v4 }
 0x25d   :  { %3325 = vmatprep.subr.bf16.mxu0 %v3689_v18  ;;  %3393 = vmatpush3.bf16.msra.mxu1 %v3704_v62  ;;  %v3717_v62 = vld [vmem:[#allocation8 + $0x80] sm:$0xff]  }
 0x25e   :  { %3394 = vmatprep.subr.bf16.mxu1 %v3898_v40 }
 0x260   :  { %3326 = vmatpush3.bf16.msra.mxu0 %v3690_v21 }
 0x261   :  { %3327 = vmatprep.subr.bf16.mxu0 %v3691_v6  ;;  %3395 = vmatpush3.bf16.msra.mxu1 %v3706_v24 }
 0x262   :  { %3396 = vmatprep.subr.bf16.mxu1 %v3898_v40 }
 0x264   :  { %3328 = vmatpush3.bf16.msra.mxu0 %v3692_v41 }
 0x265   :  { %3329 = vmatprep.subr.bf16.mxu0 %v3693_v58  ;;  %3397 = vmatpush3.bf16.msra.mxu1 %v3708_v5 }
 0x266   :  { %3398 = vmatprep.subr.bf16.mxu1 %v3898_v40 }
 0x268   :  { %3330 = vmatpush3.bf16.msra.mxu0 %v3694_v17 }
 0x269   :  { %3331 = vmatprep.subr.bf16.mxu0 %v3695_v20  ;;  %3399 = vmatpush3.bf16.msra.mxu1 %v3710_v43  ;;  %v3718_v43 = vld [vmem:[#allocation8 + $0x88] sm:$0xff]  }
 0x26a   :  { %3400 = vmatprep.subr.bf16.mxu1 %v3898_v40 }
 0x26c   :  { %3332 = vmatpush3.bf16.msra.mxu0 %v3696_v16 }
 0x26d   :  { %3333 = vmatprep.subr.bf16.mxu0 %v3697_v44  ;;  %3401 = vmatpush3.bf16.msra.mxu1 %v3712_v55  ;;  %v3719_v55 = vld [vmem:[#allocation8 + $0x90] sm:$0xff]  }
 0x26e   :  { %3402 = vmatprep.subr.bf16.mxu1 %v3898_v40 }
 0x270   :  { %3334 = vmatpush3.bf16.msra.mxu0 %v3698_v48 }
 0x271   :  { %3335 = vmatprep.subr.bf16.mxu0 %v3699_v50  ;;  %3403 = vmatpush3.bf16.msra.mxu1 %v3714_v23  ;;  %v3721_v23 = vld [vmem:[#allocation8 + $0xa0] sm:$0xff]  }
 0x272   :  { %3404 = vmatprep.subr.bf16.mxu1 %v3898_v40 }
 0x274   :  { %3336 = vmatpush3.bf16.msra.mxu0 %v3700_v11 }
 0x275   :  { %3410 = vmatprep.subr.bf16.mxu0 %v3898_v40  ;;  %3405 = vmatpush3.bf16.msra.mxu1 %v3716_v45 }
 0x276   :  { %3430 = vmatprep.subr.bf16.mxu1 %v3898_v40 }
 0x277   :  { %2630 = vmatmul.mubr.bf16.vlgmr.msra.gmra.mrb[16].mxu0 %v2206_v57 }
 0x278   :  { %3426 = vmatprep.mubr.msk.bf16.mxu0 %vm3899_vm9, %v3898_v40  ;;  %3411 = vmatpush3.bf16.msra.mxu0 %v3701_v59 }
 0x279   :  { %3412 = vmatprep.subr.bf16.mxu0 %v3898_v40 }
 0x27c   :  { %3413 = vmatpush3.bf16.msra.mxu0 %v3703_v61 }
 0x27d   :  { %3414 = vmatprep.subr.bf16.mxu0 %v3898_v40 }
 0x280   :  { %3415 = vmatpush3.bf16.msra.mxu0 %v3705_v56 }
 0x281   :  { %3416 = vmatprep.subr.bf16.mxu0 %v3898_v40 }
 0x284   :  { %3417 = vmatpush3.bf16.msra.mxu0 %v3707_v47 }
 0x285   :  { %3418 = vmatprep.subr.bf16.mxu0 %v3898_v40 }
 0x288   :  { %3419 = vmatpush3.bf16.msra.mxu0 %v3709_v9 }
 0x289   :  { %3420 = vmatprep.subr.bf16.mxu0 %v3898_v40 }
 0x28c   :  { %3421 = vmatpush3.bf16.msra.mxu0 %v3711_v22 }
 0x28d   :  { %3422 = vmatprep.subr.bf16.mxu0 %v3898_v40 }
 0x290   :  { %3423 = vmatpush3.bf16.msra.mxu0 %v3713_v2  ;;  %v3720_v2 = vld [vmem:[#allocation8 + $0x98] sm:$0xff]  }
 0x291   :  { %3424 = vmatprep.subr.bf16.mxu0 %v3898_v40 }
 0x294   :  { %3425 = vmatpush3.bf16.msra.mxu0 %v3715_v27 }
 0x2e9   :  { %v1930_v29 = vpop.f32.mrb[4].mxu1 }
 0x2ea   :  { %v1931_v30 = vadd.f32 %v1930_v29, %v1500_v28  ;;  %v1932_v31 = vpop.f32.mrb[5].mxu1  ;;  %v1971_v49 = vpop.f32.mrb[4].mxu0  ;;  %v3722_v28 = vld [vmem:[#allocation8 + $0xa8] sm:$0xff]   ;;  %v3724_v29 = vld [vmem:[#allocation8 + $0xb8] sm:$0xff]  }
 0x2eb   :  { %v1933_v7 = vadd.f32 %v1932_v31, %v1504_v3  ;;  %v1934_v46 = vpop.f32.mrb[6].mxu1  ;;  %v1973_v8 = vpop.f32.mrb[5].mxu0  ;;  %v3723_v3 = vld [vmem:[#allocation8 + $0xb0] sm:$0xff]  }
 0x2ec   :  { %v4475_v42 = vadd.f32 %v1971_v49, %v1931_v30  ;;  %v1935_v51 = vpop.f32.mrb[7].mxu1  ;;  %v1975_v13 = vpop.f32.mrb[6].mxu0  ;;  %v3197_v46 = vld [vmem:[%s4536_s9] ss:$0 sm:$0xff] }
 0x2ed   :  { %v4477_v19 = vadd.f32 %v1973_v8, %v1933_v7  ;;  %v1976_v0 = vpop.f32.mrb[7].mxu0  ;;  %v3198_v7 = vld [vmem:[%s4536_s9 + $0x1] ss:$0 sm:$0xff] }
 0x30a   :  { %v3262_v32 = vpop.f32.mrb[8].mxu0 }
 0x30b   :  { %v3263_v34 = vpop.f32.mrb[9].mxu0 }
 0x30c   :  { %v4479_v35 = vadd.f32 %v3263_v34, %v3262_v32  ;;  %v3265_v36 = vpop.f32.mrb[10].mxu0 }
 0x30d   :  { %v3266_v33 = vpop.f32.mrb[11].mxu0 }
 0x329   :  { %v3315_v1 = vpop.f32.mrb[12].mxu1 }
 0x32a   :  { %v3293_v10 = vpop.f32.mrb[12].mxu0  ;;  %v3316_v38 = vpop.f32.mrb[13].mxu1 }
 0x32b   :  { %v3317_v52 = vadd.f32 %v3316_v38, %v3315_v1  ;;  %v3294_v4 = vpop.f32.mrb[13].mxu0  ;;  %v3318_v18 = vpop.f32.mrb[14].mxu1 }
 0x32c   :  { %v3295_v21 = vadd.f32 %v3294_v4, %v3293_v10  ;;  %v3296_v6 = vpop.f32.mrb[14].mxu0  ;;  %v3319_v41 = vpop.f32.mrb[15].mxu1 }
 0x32d   :  { %v2496_v58 = vadd.f32 %v3317_v52, %v3144_v37  ;;  %v3297_v17 = vpop.f32.mrb[15].mxu0  ;;  %v1508_v52 = vrot.slane %v4467_v63, %v1130_v39  ;;  %v3199_v6 = vld [vmem:[%s4536_s9 + $0x2] ss:$0 sm:$0xff] }
 0x32e   :  { %v2360_v25 = vadd.f32 %v3295_v21, %v3143_v15  ;;  %v3900_v15 = vmov 1983009808  }
 0x32f   :  { %v3195_v20 = vmul.f32 -1.442695, %v2496_v58  ;;  %v2954_v4 = vunpack.c.l.s4 %v3900_v15  ;;  %v2013_v18 = vadd.f32 %v4479_v35, %v1508_v52 }
 0x330   :  { %v3194_v16 = vmul.f32 -1.442695, %v2360_v25 }
 0x331   :  { %3753 = vpow2.f32 %v3195_v20  ;;  %v2955_v21 = vunpack.c.0.s8 %v2954_v4 }
 0x332   :  { %3755 = vpow2.f32 %v3194_v16 }
 0x333   :  { %v2958_v41 = vsub.s32 %v2955_v21, %v4255_v60 }
 0x33b   :  { %v3754_v44 = vpop.eup %3753 }
 0x33c   :  { %v3756_v26 = vpop.eup %3755  ;;  %v2647_v14 = vadd.f32 1.0, %v3754_v44 }
 0x33d   :  { %v2646_v48 = vadd.f32 1.0, %v3756_v26 }
 0x33e   :  { %3757 = vrcp.f32 %v2647_v14 }
 0x33f   :  { %3759 = vrcp.f32 %v2646_v48 }
 0x348   :  { %v3758_v50 = vpop.eup %3757 }
 0x349   :  { %v3760_v12 = vpop.eup %3759  ;;  %v2656_v11 = vmul.f32 %v3758_v50, %v2496_v58 }
 0x34a   :  { %v2655_v54 = vmul.f32 %v3760_v12, %v2360_v25  ;;  %v3337_v57 = vpop.f32.mrb[16].mxu0 }
 0x34b   :  { %v2659_v59 = vpack.c.bf16 %v2656_v11, %v2656_v11  ;;  %v3338_v61 = vpop.f32.mrb[17].mxu0 }
 0x34c   :  { %v2658_v56 = vpack.c.bf16 %v2655_v54, %v2655_v54  ;;  %v3339_v24 = vadd.f32 %v3338_v61, %v3337_v57  ;;  %v3340_v47 = vpop.f32.mrb[18].mxu0 }
 0x34d   :  { %v3341_v5 = vpop.f32.mrb[19].mxu0  ;;  %3427 = vmatmul.mubr.bf16.vlgmr.msra.gmra.mrb[20].mxu0 %v2659_v59 }
 0x34e   :  { %v2632_v9 = vadd.f32 %v3339_v24, %v3145_v53  ;;  %3407 = vmatmul.mubr.bf16.vlgmr.msra.gmra.mrb[16].mxu1 %v2658_v56 }
 0x34f   :  { %3431 = vmatpush3.bf16.msra.mxu1 %v3717_v62  ;;  %3446 = vmatprep.mubr.msk.bf16.mxu1 %vm3899_vm9, %v3898_v40 }
 0x350   :  { %v3196_v22 = vmul.f32 -1.442695, %v2632_v9  ;;  %3432 = vmatprep.subr.bf16.mxu1 %v3898_v40 }
 0x352   :  { %3761 = vpow2.f32 %v3196_v22 }
 0x353   :  { %3433 = vmatpush3.bf16.msra.mxu1 %v3718_v43 }
 0x354   :  { %3434 = vmatprep.subr.bf16.mxu1 %v3898_v40 }
 0x357   :  { %3435 = vmatpush3.bf16.msra.mxu1 %v3719_v55 }
 0x358   :  { %3436 = vmatprep.subr.bf16.mxu1 %v3898_v40 }
 0x35b   :  { %3437 = vmatpush3.bf16.msra.mxu1 %v3720_v2 }
 0x35c   :  { %v3762_v27 = vpop.eup %3761  ;;  %3438 = vmatprep.subr.bf16.mxu1 %v3898_v40 }
 0x35d   :  { %v2648_v45 = vadd.f32 1.0, %v3762_v27 }
 0x35f   :  { %3763 = vrcp.f32 %v2648_v45  ;;  %3439 = vmatpush3.bf16.msra.mxu1 %v3721_v23 }
 0x360   :  { %3440 = vmatprep.subr.bf16.mxu1 %v3898_v40 }
 0x363   :  { %3441 = vmatpush3.bf16.msra.mxu1 %v3722_v28 }
 0x364   :  { %3442 = vmatprep.subr.bf16.mxu1 %v3898_v40 }
 0x367   :  { %3443 = vmatpush3.bf16.msra.mxu1 %v3723_v3 }
 0x368   :  { %3444 = vmatprep.subr.bf16.mxu1 %v3898_v40 }
 0x369   :  { %v3764_v30 = vpop.eup %3763 }
 0x36a   :  { %v2657_v31 = vmul.f32 %v3764_v30, %v2632_v9 }
 0x36b   :  { %3445 = vmatpush3.bf16.msra.mxu1 %v3724_v29 }
 0x36c   :  { %v2660_v49 = vpack.c.bf16 %v2657_v31, %v2657_v31 }
 0x36e   :  { %3447 = vmatmul.mubr.bf16.vlgmr.msra.gmra.mrb[8].mxu1 %v2660_v49 }
 0x420   :  { %v2852_v8 = vpop.f32.mrb[20].mxu0 }
 0x421   :  { %v2853_v51 = vadd.f32 %v3198_v7, %v2852_v8  ;;  %v2764_v13 = vpop.f32.mrb[16].mxu1  ;;  %v3428_v0 = vpop.f32.mrb[21].mxu0 }
 0x422   :  { %v2765_v32 = vadd.f32 %v3197_v46, %v2764_v13  ;;  %v3408_v34 = vpop.f32.mrb[17].mxu1  ;;  %v2855_v40 = vpop.f32.mrb[22].mxu0 }
 0x423   :  { %v2947_v36 = vadd.f32 %v2853_v51, %v4477_v19  ;;  %v2767_v33 = vpop.f32.mrb[18].mxu1  ;;  %v3429_v1 = vpop.f32.mrb[23].mxu0  ;;  %v3450_v19 = vadd.f32 %v3199_v6, %v2013_v18 }
 0x424   :  { %v2946_v10 = vadd.f32 %v2765_v32, %v4475_v42  ;;  %v3409_v37 = vpop.f32.mrb[19].mxu1 }
 0x426   :  { %v2952_v38 = vcombine.low %v2946_v10, %v2947_v36 }
 0x428   :  { %v2959_v63 = vrot.slane %v2952_v38, %v2958_v41 }
 0x441   :  { %v2940_v58 = vpop.f32.mrb[8].mxu1 }
 0x442   :  { %v3451_v42 = vadd.f32 %v3450_v19, %v2940_v58  ;;  %v3448_v17 = vpop.f32.mrb[9].mxu1 }
 0x443   :  { %v2943_v25 = vpop.f32.mrb[10].mxu1 }
 0x444   :  { %v2966_v20 = vrot.slane %v3451_v42, %v2958_v41  ;;  %v3449_v39 = vpop.f32.mrb[11].mxu1 }
 0x446   :  { %v2967_v16 = vcombine.low %v2959_v63, %v2966_v20 }
 0x448   :  { %2969 = vst [vmem:[#allocation10] sm:$0x3f] %v2967_v16 }
 0x449   :  { %3864 = shalt.err (!%p3861_p8)
}
 0x44a   :  { %s3865_s23 = scalar_lea.hbm %s4537_s10, 96 }
 0x44b   :  { %p3866_p9 = scmp.ne.s32.totalorder %s4537_s10, %s3865_s23  ;;  %p3869_p10 = scmp.lt.u32.totalorder %s3865_s23, %s4537_s10 }
 0x44d   :  { %p3871_p11 = pnand %p3869_p10, %p3866_p9 }
 0x44f   :  { %3874 = shalt.err (!%p3871_p11)
}
 0x450   :  { %2979 = dma.vmem_to_hbm [thread:$0]  %s2977_s6, 96, %s4537_s10, [#allocation4]  }
 0x451   :  { %3881 = dma.done.wait [#allocation4], 96  }
 0x452   :  { %3882 = vsyncadd [#allocation4], 4294967200 }
 0x453   :  { %2983 = vsyncpa [#allocation3], 1 }
 0x454   :  { %2984 = vsyncpa [#allocation6], 1 }
 0x455   :  { %2985 = vsyncpa [#allocation9], 1 }
 0x456   :  { %2986 = vsyncpa [#allocation4], 1 }

</bundles_post_ra>
